<compile_context>
chip_gen: v6e
topology: v6e:2x2x1
jax: 0.10.0
libtpu: 0.0.40
codegen_flags: <defaults>
</compile_context>

<pallas_src>
import jax
import jax.numpy as jnp
import numpy as np
from jax.experimental import pallas as pl
from jax.experimental.pallas import tpu as pltpu


def _round_up(x, m):
    return ((x + m - 1) // m) * m


# ----------------------------------------------------------------------------
# Pallas kernel
# ----------------------------------------------------------------------------
def make_attention_lstm_kernel(tb, ts, E1, E2, H, num_cells, num_heads,
                               use_bf16_matmul):
    head_dim = H // num_heads
    scale = 1.0 / float(np.sqrt(head_dim))
    n_in = 6 + 2 * num_cells + 8        # data/state (6) + lstm params + attn/out params
    base = 2 * num_cells                # offset of attention weights inside w_refs

    def kernel(*refs):
        mem_ref, mask_ref, x0_ref, ph_ref, pc_ref, hm_ref = refs[:6]
        w_refs = refs[6:n_in]
        out_ref, ctx_ref, hid_ref, cell_ref = refs[n_in:n_in + 4]
        q_scr, m_scr, l_scr, ctx_scr = refs[n_in + 4:]

        s_idx = pl.program_id(1)

        # ---- first S tile: stacked LSTM cells + query projection ------------
        # (PyTorch gate order: i, f, g, o.  One fused matmul per cell:
        #  concat([x, h_prev]) @ [w_ih; w_hh]^T, weights pre-transposed.)
        @pl.when(s_idx == 0)
        def _():
            x = x0_ref[...]                                   # (tb, E2+H)
            for i in range(num_cells):
                w = w_refs[2 * i][...]                        # (in_i + H, 4H)
                b = w_refs[2 * i + 1][...]                    # (1, 4H)
                h_prev = ph_ref[i]                            # (tb, H)  leading-axis index
                c_prev = pc_ref[i]
                xh = jnp.concatenate([x, h_prev], axis=1)     # (tb, in_i + H)
                gates = jnp.dot(xh, w, preferred_element_type=jnp.float32) + b
                ig = jax.nn.sigmoid(gates[:, 0:H])
                fg = jax.nn.sigmoid(gates[:, H:2 * H])
                gg = jnp.tanh(gates[:, 2 * H:3 * H])
                og = jax.nn.sigmoid(gates[:, 3 * H:4 * H])
                c_new = fg * c_prev + ig * gg
                h_new = og * jnp.tanh(c_new)
                hid_ref[i] = h_new                            # leading-axis store
                cell_ref[i] = c_new
                x = h_new

            # query from the last cell's hidden state
            wq_t = w_refs[base][...]                          # (H, H)
            bq = w_refs[base + 1][...]                        # (1, H)
            q = jnp.dot(x, wq_t, preferred_element_type=jnp.float32) + bq   # (tb, H)
            # Block-diagonal per-head query (zeros outside each head's slice):
            # lets scores/context for all heads be ONE batched einsum each.
            q_scr[...] = q[:, None, :] * hm_ref[...][None, :, :]            # (tb, nh, H)

            # online-softmax accumulators
            m_scr[...] = jnp.full((tb, num_heads, 1), -1e30, dtype=jnp.float32)
            l_scr[...] = jnp.zeros((tb, num_heads, 1), dtype=jnp.float32)
            ctx_scr[...] = jnp.zeros((tb, num_heads, H), dtype=jnp.float32)

        # ---- every S tile: fused K/V projection + online-softmax update -----
        wkv_t = w_refs[base + 2][...]                         # (E1, 2H)
        bkv = w_refs[base + 3][...]                           # (1, 2H)
        mem2 = mem_ref[...].reshape(tb * ts, E1)              # relayout-free (ts % 8 == 0)
        if use_bf16_matmul:
            kv = jnp.dot(mem2.astype(jnp.bfloat16), wkv_t.astype(jnp.bfloat16),
                         preferred_element_type=jnp.float32)
        else:
            kv = jnp.dot(mem2, wkv_t, preferred_element_type=jnp.float32)
        kv = (kv + bkv).reshape(tb, ts, 2 * H)
        k = kv[:, :, :H]                                      # lane-aligned if H % 128 == 0
        v = kv[:, :, H:]

        # scores for ALL heads at once (MXU batched contraction, M = num_heads)
        s3 = jnp.einsum('bhd,bsd->bhs', q_scr[...], k,
                        preferred_element_type=jnp.float32) * scale         # (tb, nh, ts)
        s3 = s3 + mask_ref[...][:, None, :]                   # additive key-padding mask

        m_prev = m_scr[...]
        m_new = jnp.maximum(m_prev, jnp.max(s3, axis=-1, keepdims=True))
        alpha = jnp.exp(m_prev - m_new)
        p = jnp.exp(s3 - m_new)
        l_scr[...] = alpha * l_scr[...] + jnp.sum(p, axis=-1, keepdims=True)
        ctx_scr[...] = alpha * ctx_scr[...] + jnp.einsum(
            'bhs,bsd->bhd', p, v, preferred_element_type=jnp.float32)       # (tb, nh, H)
        m_scr[...] = m_new

        # ---- last S tile: finalize softmax + output projections -------------
        @pl.when(s_idx == pl.num_programs(1) - 1)
        def _():
            inv_l = pl.reciprocal(l_scr[...], approx=True)    # EUP reciprocal (free slot)
            ctx_all = ctx_scr[...] * inv_l                    # (tb, nh, H)
            # Keep each head's own slice (block-diagonal structure) and merge.
            ctx = jnp.sum(ctx_all * hm_ref[...][None, :, :], axis=1)        # (tb, H)
            wo_t = w_refs[base + 4][...]
            bo = w_refs[base + 5][...]
            wout_t = w_refs[base + 6][...]
            bout = w_refs[base + 7][...]
            ctx_o = jnp.dot(ctx, wo_t, preferred_element_type=jnp.float32) + bo
            out = jnp.dot(ctx_o, wout_t, preferred_element_type=jnp.float32) + bout
            ctx_ref[...] = ctx_o
            out_ref[...] = out

    return kernel


# ----------------------------------------------------------------------------
# Wrapper: default states, mask -> additive mask, tiling, weight packing
# ----------------------------------------------------------------------------
def attention_lstm_cell(params, memory, prev_predict, prev_attn=None,
                        prev_state=None, memory_key_padding_mask=None, *,
                        hidden_size, num_cells, num_heads,
                        s_tile=None, b_tile=None, use_bf16_matmul=False):
    B, S, E1 = memory.shape
    E2 = prev_predict.shape[1]
    H = hidden_size
    assert H % num_heads == 0

    if prev_attn is None:
        prev_attn = jnp.zeros((B, H), jnp.float32)
    if prev_state is None:
        z = jnp.zeros((B, num_cells * H), jnp.float32)
        prev_state = (z, z)
    prev_h, prev_c = prev_state

    if memory_key_padding_mask is None:
        addmask = jnp.zeros((B, S), jnp.float32)
    else:
        addmask = jnp.where(memory_key_padding_mask, -1e30, 0.0).astype(jnp.float32)

    # ---- tiling ---------------------------------------------------------
    if b_tile is None:
        b_tile = 8 if (B > 8 and B % 8 == 0) else B   # >=2 tiles -> megacore sharding
    tb = b_tile
    assert B % tb == 0 and (tb == B or tb % 8 == 0)

    if s_tile is None:
        s_tile = S if S <= 512 else 512
    ts = _round_up(min(s_tile, S), 8)                 # sublane multiple
    S_pad = _round_up(S, ts)
    num_s = S_pad // ts
    # mask block (tb, ts): lane dim must be a 128-multiple unless it spans all of S_pad
    assert num_s == 1 or ts % 128 == 0, (ts, S_pad)

    if S_pad > S:
        memory = jnp.pad(memory, ((0, 0), (0, S_pad - S), (0, 0)))
        addmask = jnp.pad(addmask, ((0, 0), (0, S_pad - S)), constant_values=-1e30)

    # ---- kernel inputs --------------------------------------------------
    x0 = jnp.concatenate([prev_predict.astype(jnp.float32),
                          prev_attn.astype(jnp.float32)], axis=1)            # (B, E2+H)
    # (num_cells, B, H) state: per-cell indexing on the leading axis is free.
    ph = prev_h.reshape(B, num_cells, H).transpose(1, 0, 2)
    pc = prev_c.reshape(B, num_cells, H).transpose(1, 0, 2)
    head_dim = H // num_heads
    head_mask = (jnp.arange(H)[None, :] // head_dim
                 == jnp.arange(num_heads)[:, None]).astype(jnp.float32)      # (nh, H)

    inputs = [memory.astype(jnp.float32), addmask, x0, ph, pc, head_mask]

    # Fused + pre-transposed LSTM weights: (in_i + H, 4H).
    # TODO(synk): hoist this packing (and the step-invariant K/V projection of
    #             `memory`) out of an autoregressive decode loop.
    for i in range(num_cells):
        w_fused = jnp.concatenate(
            [params[f"w_ih_{i}"], params[f"w_hh_{i}"]], axis=1).T
        inputs += [w_fused, params[f"b_{i}"]]

    # Fused K/V projection weight: (E1, 2H); all attention weights pre-transposed.
    wkv_t = jnp.concatenate([params["wk"], params["wv"]], axis=0).T
    bkv = jnp.concatenate([params["bk"], params["bv"]], axis=1)
    inputs += [params["wq"].T, params["bq"], wkv_t, bkv,
               params["wo"].T, params["bo"], params["w_out"].T, params["b_out"]]

    # ---- BlockSpecs ------------------------------------------------------
    def const_spec(arr):
        zeros = (0,) * arr.ndim     # constant index map -> DMA'd once, VMEM-resident
        return pl.BlockSpec(arr.shape, lambda b, s, _z=zeros: _z)

    in_specs = [
        pl.BlockSpec((tb, ts, E1), lambda b, s: (b, s, 0)),          # memory (S-blocked)
        pl.BlockSpec((tb, ts), lambda b, s: (b, s)),                 # additive mask
        pl.BlockSpec((tb, E2 + H), lambda b, s: (b, 0)),             # concat(pred, attn)
        pl.BlockSpec((num_cells, tb, H), lambda b, s: (0, b, 0)),    # prev hidden
        pl.BlockSpec((num_cells, tb, H), lambda b, s: (0, b, 0)),    # prev cell
        const_spec(head_mask),
    ] + [const_spec(w) for w in inputs[6:]]

    out_shapes = (
        jax.ShapeDtypeStruct((B, E2), jnp.float32),                  # out
        jax.ShapeDtypeStruct((B, H), jnp.float32),                   # context
        jax.ShapeDtypeStruct((num_cells, B, H), jnp.float32),        # hidden
        jax.ShapeDtypeStruct((num_cells, B, H), jnp.float32),        # cell
    )
    out_specs = (
        pl.BlockSpec((tb, E2), lambda b, s: (b, 0)),
        pl.BlockSpec((tb, H), lambda b, s: (b, 0)),
        pl.BlockSpec((num_cells, tb, H), lambda b, s: (0, b, 0)),
        pl.BlockSpec((num_cells, tb, H), lambda b, s: (0, b, 0)),
    )

    kernel = make_attention_lstm_kernel(tb, ts, E1, E2, H, num_cells, num_heads,
                                        use_bf16_matmul)

    out, ctx, hid3, cell3 = pl.pallas_call(
        kernel,
        out_shape=out_shapes,
        grid_spec=pltpu.PrefetchScalarGridSpec(
            num_scalar_prefetch=0,
            grid=(B // tb, num_s),
            in_specs=in_specs,
            out_specs=out_specs,
            scratch_shapes=[
                pltpu.VMEM((tb, num_heads, H), jnp.float32),   # head-blocked query
                pltpu.VMEM((tb, num_heads, 1), jnp.float32),   # running max  (m)
                pltpu.VMEM((tb, num_heads, 1), jnp.float32),   # running sum  (l)
                pltpu.VMEM((tb, num_heads, H), jnp.float32),   # running context
            ]),
        compiler_params=pltpu.CompilerParams(
            dimension_semantics=("parallel", "arbitrary"),
            vmem_limit_bytes=64 * 1024 * 1024),
    )(*inputs)

    hid = hid3.transpose(1, 0, 2).reshape(B, num_cells * H)
    cell = cell3.transpose(1, 0, 2).reshape(B, num_cells * H)
    return out, ctx, (hid, cell)


# ----------------------------------------------------------------------------
# Pure-JAX reference (same math, no Pallas) for correctness checking
# ----------------------------------------------------------------------------
def reference(params, memory, prev_predict, prev_attn, prev_h, prev_c,
              key_padding_mask, *, hidden_size, num_cells, num_heads):
    H = hidden_size
    B, S, _ = memory.shape
    head_dim = H // num_heads
    x = jnp.concatenate([prev_predict, prev_attn], axis=1)
    hs, cs = [], []
    for i in range(num_cells):
        w_ih, w_hh, b = params[f"w_ih_{i}"], params[f"w_hh_{i}"], params[f"b_{i}"]
        h_prev = prev_h[:, i * H:(i + 1) * H]
        c_prev = prev_c[:, i * H:(i + 1) * H]
        gates = x @ w_ih.T + h_prev @ w_hh.T + b
        ig = jax.nn.sigmoid(gates[:, :H])
        fg = jax.nn.sigmoid(gates[:, H:2 * H])
        gg = jnp.tanh(gates[:, 2 * H:3 * H])
        og = jax.nn.sigmoid(gates[:, 3 * H:])
        c_new = fg * c_prev + ig * gg
        h_new = og * jnp.tanh(c_new)
        hs.append(h_new); cs.append(c_new)
        x = h_new
    out_hidden = jnp.concatenate(hs, axis=1)
    out_cell = jnp.concatenate(cs, axis=1)

    q = hs[-1] @ params["wq"].T + params["bq"]
    k = memory @ params["wk"].T + params["bk"]
    v = memory @ params["wv"].T + params["bv"]
    addmask = jnp.where(key_padding_mask, -1e30, 0.0) if key_padding_mask is not None \
        else jnp.zeros((B, S), jnp.float32)
    ctx_heads = []
    for h in range(num_heads):
        lo, hi = h * head_dim, (h + 1) * head_dim
        scores = jnp.einsum('bd,bsd->bs', q[:, lo:hi], k[:, :, lo:hi]) / np.sqrt(head_dim)
        scores = scores + addmask
        p = jax.nn.softmax(scores, axis=-1)
        ctx_heads.append(jnp.einsum('bs,bsd->bd', p, v[:, :, lo:hi]))
    ctx = jnp.concatenate(ctx_heads, axis=1)
    ctx = ctx @ params["wo"].T + params["bo"]
    out = ctx @ params["w_out"].T + params["b_out"]
    return out, ctx, (out_hidden, out_cell)


# ----------------------------------------------------------------------------
# Deterministic parameter construction (shapes match the PyTorch module)
# ----------------------------------------------------------------------------
def init_params(key, memory_size, embed_size, hidden_size, num_cells):
    H = hidden_size
    params = {}

    def uni(key, shape, bound):
        return jax.random.uniform(key, shape, jnp.float32, -bound, bound)

    keys = iter(jax.random.split(key, 8 * num_cells + 32))
    for i in range(num_cells):
        in_dim = H + embed_size if i == 0 else H
        bound = 1.0 / np.sqrt(H)
        params[f"w_ih_{i}"] = uni(next(keys), (4 * H, in_dim), bound)
        params[f"w_hh_{i}"] = uni(next(keys), (4 * H, H), bound)
        # b_ih + b_hh combined into a single (1, 4H) bias
        params[f"b_{i}"] = uni(next(keys), (1, 4 * H), bound) + uni(next(keys), (1, 4 * H), bound)

    bq = 1.0 / np.sqrt(H)
    bk = 1.0 / np.sqrt(memory_size)
    params["wq"] = uni(next(keys), (H, H), bq)
    params["bq"] = uni(next(keys), (1, H), bq)
    params["wk"] = uni(next(keys), (H, memory_size), bk)
    params["bk"] = uni(next(keys), (1, H), bk)
    params["wv"] = uni(next(keys), (H, memory_size), bk)
    params["bv"] = uni(next(keys), (1, H), bk)
    params["wo"] = uni(next(keys), (H, H), bq)
    params["bo"] = uni(next(keys), (1, H), bq)
    params["w_out"] = uni(next(keys), (embed_size, H), bq)
    params["b_out"] = uni(next(keys), (1, embed_size), bq)
    return params


def _run_and_check(seed, B, S, memory_size, embed_size, hidden_size,
                   num_cells, num_heads, s_tile=None):
    root = jax.random.PRNGKey(seed)
    kp, km, kpr, ka, kh, kc = jax.random.split(root, 6)

    params = init_params(kp, memory_size, embed_size, hidden_size, num_cells)

    memory = jax.random.normal(km, (B, S, memory_size), jnp.float32)
    prev_predict = jax.random.normal(kpr, (B, embed_size), jnp.float32)
    prev_attn = jax.random.normal(ka, (B, hidden_size), jnp.float32)
    prev_h = jax.random.normal(kh, (B, num_cells * hidden_size), jnp.float32)
    prev_c = jax.random.normal(kc, (B, num_cells * hidden_size), jnp.float32)
    # key_padding_mask: True = padded/ignored; mask the tail of batch row 1
    lens = jnp.array([S, S - max(2, S // 8)])
    key_padding_mask = jnp.arange(S)[None, :] >= lens[:, None]

    out, ctx, (hid, cell) = attention_lstm_cell(
        params, memory, prev_predict, prev_attn, (prev_h, prev_c),
        key_padding_mask, hidden_size=hidden_size, num_cells=num_cells,
        num_heads=num_heads, s_tile=s_tile)
    jax.block_until_ready((out, ctx, hid, cell))

    r_out, r_ctx, (r_hid, r_cell) = reference(
        params, memory, prev_predict, prev_attn, prev_h, prev_c,
        key_padding_mask, hidden_size=hidden_size, num_cells=num_cells,
        num_heads=num_heads)

    # LSTM path is exact f32 math (fusion only reorders the sum) -> tight tol.
    np.testing.assert_allclose(np.asarray(hid), np.asarray(r_hid), rtol=1e-4, atol=1e-4)
    np.testing.assert_allclose(np.asarray(cell), np.asarray(r_cell), rtol=1e-4, atol=1e-4)
    # Attention path uses the EUP approximate reciprocal + online softmax -> relaxed tol.
    np.testing.assert_allclose(np.asarray(ctx), np.asarray(r_ctx), rtol=5e-3, atol=5e-3)
    np.testing.assert_allclose(np.asarray(out), np.asarray(r_out), rtol=5e-3, atol=5e-3)


if __name__ == "__main__":
    # Small configs consistent with the module's forward.
    # 1) single S tile (grid (1, 1)), 2 stacked cells, 1 head.
    _run_and_check(seed=0, B=2, S=8, memory_size=32, embed_size=16,
                   hidden_size=32, num_cells=2, num_heads=1)
    # 2) two S tiles (exercises online-softmax accumulation + pipelining), 2 heads.
    _run_and_check(seed=1, B=2, S=256, memory_size=32, embed_size=16,
                   hidden_size=32, num_cells=1, num_heads=2, s_tile=128)
    print("KERNEL_OK")
</pallas_src>

<mosaic_0001>
module attributes {stable_mosaic.version = 11 : i64} {
  func.func @kernel(%arg0: i32, %arg1: i32, %arg2: memref<2x8x32xf32, #tpu.memory_space<vmem>>, %arg3: memref<2x8xf32, #tpu.memory_space<vmem>>, %arg4: memref<2x48xf32, #tpu.memory_space<vmem>>, %arg5: memref<2x2x32xf32, #tpu.memory_space<vmem>>, %arg6: memref<2x2x32xf32, #tpu.memory_space<vmem>>, %arg7: memref<1x32xf32, #tpu.memory_space<vmem>>, %arg8: memref<80x128xf32, #tpu.memory_space<vmem>>, %arg9: memref<1x128xf32, #tpu.memory_space<vmem>>, %arg10: memref<64x128xf32, #tpu.memory_space<vmem>>, %arg11: memref<1x128xf32, #tpu.memory_space<vmem>>, %arg12: memref<32x32xf32, #tpu.memory_space<vmem>>, %arg13: memref<1x32xf32, #tpu.memory_space<vmem>>, %arg14: memref<32x64xf32, #tpu.memory_space<vmem>>, %arg15: memref<1x64xf32, #tpu.memory_space<vmem>>, %arg16: memref<32x32xf32, #tpu.memory_space<vmem>>, %arg17: memref<1x32xf32, #tpu.memory_space<vmem>>, %arg18: memref<32x16xf32, #tpu.memory_space<vmem>>, %arg19: memref<1x16xf32, #tpu.memory_space<vmem>>, %arg20: memref<2x16xf32, #tpu.memory_space<vmem>>, %arg21: memref<2x32xf32, #tpu.memory_space<vmem>>, %arg22: memref<2x2x32xf32, #tpu.memory_space<vmem>>, %arg23: memref<2x2x32xf32, #tpu.memory_space<vmem>>, %arg24: memref<2x1x32xf32, #tpu.memory_space<vmem>>, %arg25: memref<2x1x1xf32, #tpu.memory_space<vmem>>, %arg26: memref<2x1x1xf32, #tpu.memory_space<vmem>>, %arg27: memref<2x1x32xf32, #tpu.memory_space<vmem>>) attributes {dimension_semantics = [#tpu.dimension_semantics<parallel>, #tpu.dimension_semantics<arbitrary>], iteration_bounds = array<i64: 1, 1>, scalar_prefetch = 0 : i64, scratch_operands = 4 : i64, tpu.core_type = #tpu.core_type<tc>, window_params = [{transform_indices = @transform_0, window_bounds = array<i64: 2, 8, 32>}, {transform_indices = @transform_1, window_bounds = array<i64: 2, 8>}, {transform_indices = @transform_2, window_bounds = array<i64: 2, 48>}, {transform_indices = @transform_3, window_bounds = array<i64: 2, 2, 32>}, {transform_indices = @transform_4, window_bounds = array<i64: 2, 2, 32>}, {pipeline_mode = #tpu.pipeline_mode<synchronous>, transform_indices = @transform_5, window_bounds = array<i64: 1, 32>}, {pipeline_mode = #tpu.pipeline_mode<synchronous>, transform_indices = @transform_6, window_bounds = array<i64: 80, 128>}, {pipeline_mode = #tpu.pipeline_mode<synchronous>, transform_indices = @transform_7, window_bounds = array<i64: 1, 128>}, {pipeline_mode = #tpu.pipeline_mode<synchronous>, transform_indices = @transform_8, window_bounds = array<i64: 64, 128>}, {pipeline_mode = #tpu.pipeline_mode<synchronous>, transform_indices = @transform_9, window_bounds = array<i64: 1, 128>}, {pipeline_mode = #tpu.pipeline_mode<synchronous>, transform_indices = @transform_10, window_bounds = array<i64: 32, 32>}, {pipeline_mode = #tpu.pipeline_mode<synchronous>, transform_indices = @transform_11, window_bounds = array<i64: 1, 32>}, {pipeline_mode = #tpu.pipeline_mode<synchronous>, transform_indices = @transform_12, window_bounds = array<i64: 32, 64>}, {pipeline_mode = #tpu.pipeline_mode<synchronous>, transform_indices = @transform_13, window_bounds = array<i64: 1, 64>}, {pipeline_mode = #tpu.pipeline_mode<synchronous>, transform_indices = @transform_14, window_bounds = array<i64: 32, 32>}, {pipeline_mode = #tpu.pipeline_mode<synchronous>, transform_indices = @transform_15, window_bounds = array<i64: 1, 32>}, {pipeline_mode = #tpu.pipeline_mode<synchronous>, transform_indices = @transform_16, window_bounds = array<i64: 32, 16>}, {pipeline_mode = #tpu.pipeline_mode<synchronous>, transform_indices = @transform_17, window_bounds = array<i64: 1, 16>}, {transform_indices = @transform_18, window_bounds = array<i64: 2, 16>}, {transform_indices = @transform_19, window_bounds = array<i64: 2, 32>}, {transform_indices = @transform_20, window_bounds = array<i64: 2, 2, 32>}, {transform_indices = @transform_21, window_bounds = array<i64: 2, 2, 32>}]} {
    %c0_i32 = arith.constant 0 : i32
    %0 = arith.cmpi eq, %arg1, %c0_i32 : i32
    %1 = arith.extui %0 : i1 to i32
    %c0_i32_0 = arith.constant 0 : i32
    %2 = arith.cmpi ne, %1, %c0_i32_0 : i32
    scf.if %2 {
      %c0_37 = arith.constant 0 : index
      %c0_38 = arith.constant 0 : index
      %45 = vector.load %arg4[%c0_37, %c0_38] : memref<2x48xf32, #tpu.memory_space<vmem>>, vector<2x48xf32>
      %c0_39 = arith.constant 0 : index
      %c0_40 = arith.constant 0 : index
      %46 = vector.load %arg8[%c0_39, %c0_40] : memref<80x128xf32, #tpu.memory_space<vmem>>, vector<80x128xf32>
      %c0_41 = arith.constant 0 : index
      %c0_42 = arith.constant 0 : index
      %47 = vector.load %arg9[%c0_41, %c0_42] : memref<1x128xf32, #tpu.memory_space<vmem>>, vector<1x128xf32>
      %c0_43 = arith.constant 0 : index
      %c0_44 = arith.constant 0 : index
      %c0_45 = arith.constant 0 : index
      %48 = vector.load %arg5[%c0_43, %c0_44, %c0_45] : memref<2x2x32xf32, #tpu.memory_space<vmem>>, vector<1x2x32xf32>
      %49 = vector.shape_cast %48 : vector<1x2x32xf32> to vector<2x32xf32>
      %c0_46 = arith.constant 0 : index
      %c0_47 = arith.constant 0 : index
      %c0_48 = arith.constant 0 : index
      %50 = vector.load %arg6[%c0_46, %c0_47, %c0_48] : memref<2x2x32xf32, #tpu.memory_space<vmem>>, vector<1x2x32xf32>
      %51 = vector.shape_cast %50 : vector<1x2x32xf32> to vector<2x32xf32>
      %52 = tpu.concatenate %45, %49 in 1 : vector<2x48xf32>, vector<2x32xf32> -> vector<2x80xf32>
      %cst_49 = arith.constant dense<0.000000e+00> : vector<2x128xf32>
      %53 = tpu.matmul %52, %46, %cst_49 {dimension_numbers = #tpu.dot_dimension_numbers<[1], [0], [0], [1], [0, 0, 1, 1], [], []>} : vector<2x80xf32>, vector<80x128xf32>, vector<2x128xf32> -> vector<2x128xf32>
      %54 = vector.broadcast %47 : vector<1x128xf32> to vector<2x128xf32>
      %55 = arith.addf %53, %54 : vector<2x128xf32>
      %56 = vector.extract_strided_slice %55 {offsets = [0, 0], sizes = [2, 32], strides = [1, 1]} : vector<2x128xf32> to vector<2x32xf32>
      %57 = arith.negf %56 : vector<2x32xf32>
      %58 = math.exp %57 : vector<2x32xf32>
      %cst_50 = arith.constant 1.000000e+00 : f32
      %59 = vector.broadcast %cst_50 : f32 to vector<2x32xf32>
      %60 = arith.addf %59, %58 : vector<2x32xf32>
      %61 = arith.divf %59, %60 : vector<2x32xf32>
      %62 = vector.extract_strided_slice %55 {offsets = [0, 32], sizes = [2, 32], strides = [1, 1]} : vector<2x128xf32> to vector<2x32xf32>
      %63 = arith.negf %62 : vector<2x32xf32>
      %64 = math.exp %63 : vector<2x32xf32>
      %cst_51 = arith.constant 1.000000e+00 : f32
      %65 = vector.broadcast %cst_51 : f32 to vector<2x32xf32>
      %66 = arith.addf %65, %64 : vector<2x32xf32>
      %67 = arith.divf %65, %66 : vector<2x32xf32>
      %68 = vector.extract_strided_slice %55 {offsets = [0, 64], sizes = [2, 32], strides = [1, 1]} : vector<2x128xf32> to vector<2x32xf32>
      %69 = math.tanh %68 : vector<2x32xf32>
      %70 = vector.extract_strided_slice %55 {offsets = [0, 96], sizes = [2, 32], strides = [1, 1]} : vector<2x128xf32> to vector<2x32xf32>
      %71 = arith.negf %70 : vector<2x32xf32>
      %72 = math.exp %71 : vector<2x32xf32>
      %cst_52 = arith.constant 1.000000e+00 : f32
      %73 = vector.broadcast %cst_52 : f32 to vector<2x32xf32>
      %74 = arith.addf %73, %72 : vector<2x32xf32>
      %75 = arith.divf %73, %74 : vector<2x32xf32>
      %76 = arith.mulf %67, %51 : vector<2x32xf32>
      %77 = arith.mulf %61, %69 : vector<2x32xf32>
      %78 = arith.addf %76, %77 : vector<2x32xf32>
      %79 = math.tanh %78 : vector<2x32xf32>
      %80 = arith.mulf %75, %79 : vector<2x32xf32>
      %c0_53 = arith.constant 0 : index
      %c0_54 = arith.constant 0 : index
      %c0_55 = arith.constant 0 : index
      %81 = vector.load %arg22[%c0_53, %c0_54, %c0_55] : memref<2x2x32xf32, #tpu.memory_space<vmem>>, vector<1x2x32xf32>
      %82 = vector.shape_cast %81 : vector<1x2x32xf32> to vector<2x32xf32>
      %83 = vector.shape_cast %80 : vector<2x32xf32> to vector<1x2x32xf32>
      tpu.vector_store %arg22[%c0_53, %c0_54, %c0_55], %83 {strides = array<i32>} : memref<2x2x32xf32, #tpu.memory_space<vmem>>, vector<1x2x32xf32>,
      %c0_56 = arith.constant 0 : index
      %c0_57 = arith.constant 0 : index
      %c0_58 = arith.constant 0 : index
      %84 = vector.load %arg23[%c0_56, %c0_57, %c0_58] : memref<2x2x32xf32, #tpu.memory_space<vmem>>, vector<1x2x32xf32>
      %85 = vector.shape_cast %84 : vector<1x2x32xf32> to vector<2x32xf32>
      %86 = vector.shape_cast %78 : vector<2x32xf32> to vector<1x2x32xf32>
      tpu.vector_store %arg23[%c0_56, %c0_57, %c0_58], %86 {strides = array<i32>} : memref<2x2x32xf32, #tpu.memory_space<vmem>>, vector<1x2x32xf32>,
      %c0_59 = arith.constant 0 : index
      %c0_60 = arith.constant 0 : index
      %87 = vector.load %arg10[%c0_59, %c0_60] : memref<64x128xf32, #tpu.memory_space<vmem>>, vector<64x128xf32>
      %c0_61 = arith.constant 0 : index
      %c0_62 = arith.constant 0 : index
      %88 = vector.load %arg11[%c0_61, %c0_62] : memref<1x128xf32, #tpu.memory_space<vmem>>, vector<1x128xf32>
      %c1 = arith.constant 1 : index
      %c0_63 = arith.constant 0 : index
      %c0_64 = arith.constant 0 : index
      %89 = vector.load %arg5[%c1, %c0_63, %c0_64] : memref<2x2x32xf32, #tpu.memory_space<vmem>>, vector<1x2x32xf32>
      %90 = vector.shape_cast %89 : vector<1x2x32xf32> to vector<2x32xf32>
      %c1_65 = arith.constant 1 : index
      %c0_66 = arith.constant 0 : index
      %c0_67 = arith.constant 0 : index
      %91 = vector.load %arg6[%c1_65, %c0_66, %c0_67] : memref<2x2x32xf32, #tpu.memory_space<vmem>>, vector<1x2x32xf32>
      %92 = vector.shape_cast %91 : vector<1x2x32xf32> to vector<2x32xf32>
      %93 = tpu.concatenate %80, %90 in 1 : vector<2x32xf32>, vector<2x32xf32> -> vector<2x64xf32>
      %cst_68 = arith.constant dense<0.000000e+00> : vector<2x128xf32>
      %94 = tpu.matmul %93, %87, %cst_68 {dimension_numbers = #tpu.dot_dimension_numbers<[1], [0], [0], [1], [0, 0, 1, 1], [], []>} : vector<2x64xf32>, vector<64x128xf32>, vector<2x128xf32> -> vector<2x128xf32>
      %95 = vector.broadcast %88 : vector<1x128xf32> to vector<2x128xf32>
      %96 = arith.addf %94, %95 : vector<2x128xf32>
      %97 = vector.extract_strided_slice %96 {offsets = [0, 0], sizes = [2, 32], strides = [1, 1]} : vector<2x128xf32> to vector<2x32xf32>
      %98 = arith.negf %97 : vector<2x32xf32>
      %99 = math.exp %98 : vector<2x32xf32>
      %cst_69 = arith.constant 1.000000e+00 : f32
      %100 = vector.broadcast %cst_69 : f32 to vector<2x32xf32>
      %101 = arith.addf %100, %99 : vector<2x32xf32>
      %102 = arith.divf %100, %101 : vector<2x32xf32>
      %103 = vector.extract_strided_slice %96 {offsets = [0, 32], sizes = [2, 32], strides = [1, 1]} : vector<2x128xf32> to vector<2x32xf32>
      %104 = arith.negf %103 : vector<2x32xf32>
      %105 = math.exp %104 : vector<2x32xf32>
      %cst_70 = arith.constant 1.000000e+00 : f32
      %106 = vector.broadcast %cst_70 : f32 to vector<2x32xf32>
      %107 = arith.addf %106, %105 : vector<2x32xf32>
      %108 = arith.divf %106, %107 : vector<2x32xf32>
      %109 = vector.extract_strided_slice %96 {offsets = [0, 64], sizes = [2, 32], strides = [1, 1]} : vector<2x128xf32> to vector<2x32xf32>
      %110 = math.tanh %109 : vector<2x32xf32>
      %111 = vector.extract_strided_slice %96 {offsets = [0, 96], sizes = [2, 32], strides = [1, 1]} : vector<2x128xf32> to vector<2x32xf32>
      %112 = arith.negf %111 : vector<2x32xf32>
      %113 = math.exp %112 : vector<2x32xf32>
      %cst_71 = arith.constant 1.000000e+00 : f32
      %114 = vector.broadcast %cst_71 : f32 to vector<2x32xf32>
      %115 = arith.addf %114, %113 : vector<2x32xf32>
      %116 = arith.divf %114, %115 : vector<2x32xf32>
      %117 = arith.mulf %108, %92 : vector<2x32xf32>
      %118 = arith.mulf %102, %110 : vector<2x32xf32>
      %119 = arith.addf %117, %118 : vector<2x32xf32>
      %120 = math.tanh %119 : vector<2x32xf32>
      %121 = arith.mulf %116, %120 : vector<2x32xf32>
      %c1_72 = arith.constant 1 : index
      %c0_73 = arith.constant 0 : index
      %c0_74 = arith.constant 0 : index
      %122 = vector.load %arg22[%c1_72, %c0_73, %c0_74] : memref<2x2x32xf32, #tpu.memory_space<vmem>>, vector<1x2x32xf32>
      %123 = vector.shape_cast %122 : vector<1x2x32xf32> to vector<2x32xf32>
      %124 = vector.shape_cast %121 : vector<2x32xf32> to vector<1x2x32xf32>
      tpu.vector_store %arg22[%c1_72, %c0_73, %c0_74], %124 {strides = array<i32>} : memref<2x2x32xf32, #tpu.memory_space<vmem>>, vector<1x2x32xf32>,
      %c1_75 = arith.constant 1 : index
      %c0_76 = arith.constant 0 : index
      %c0_77 = arith.constant 0 : index
      %125 = vector.load %arg23[%c1_75, %c0_76, %c0_77] : memref<2x2x32xf32, #tpu.memory_space<vmem>>, vector<1x2x32xf32>
      %126 = vector.shape_cast %125 : vector<1x2x32xf32> to vector<2x32xf32>
      %127 = vector.shape_cast %119 : vector<2x32xf32> to vector<1x2x32xf32>
      tpu.vector_store %arg23[%c1_75, %c0_76, %c0_77], %127 {strides = array<i32>} : memref<2x2x32xf32, #tpu.memory_space<vmem>>, vector<1x2x32xf32>,
      %c0_78 = arith.constant 0 : index
      %c0_79 = arith.constant 0 : index
      %128 = vector.load %arg12[%c0_78, %c0_79] : memref<32x32xf32, #tpu.memory_space<vmem>>, vector<32x32xf32>
      %c0_80 = arith.constant 0 : index
      %c0_81 = arith.constant 0 : index
      %129 = vector.load %arg13[%c0_80, %c0_81] : memref<1x32xf32, #tpu.memory_space<vmem>>, vector<1x32xf32>
      %cst_82 = arith.constant dense<0.000000e+00> : vector<2x32xf32>
      %130 = tpu.matmul %121, %128, %cst_82 {dimension_numbers = #tpu.dot_dimension_numbers<[1], [0], [0], [1], [0, 0, 1, 1], [], []>} : vector<2x32xf32>, vector<32x32xf32>, vector<2x32xf32> -> vector<2x32xf32>
      %131 = vector.broadcast %129 : vector<1x32xf32> to vector<2x32xf32>
      %132 = arith.addf %130, %131 : vector<2x32xf32>
      %133 = vector.shape_cast %132 : vector<2x32xf32> to vector<2x1x32xf32>
      %c0_83 = arith.constant 0 : index
      %c0_84 = arith.constant 0 : index
      %134 = vector.load %arg7[%c0_83, %c0_84] : memref<1x32xf32, #tpu.memory_space<vmem>>, vector<1x32xf32>
      %135 = vector.shape_cast %134 : vector<1x32xf32> to vector<1x1x32xf32>
      %136 = vector.broadcast %135 : vector<1x1x32xf32> to vector<2x1x32xf32>
      %137 = arith.mulf %133, %136 : vector<2x1x32xf32>
      %c0_85 = arith.constant 0 : index
      %c0_86 = arith.constant 0 : index
      %c0_87 = arith.constant 0 : index
      %138 = vector.load %arg24[%c0_85, %c0_86, %c0_87] : memref<2x1x32xf32, #tpu.memory_space<vmem>>, vector<2x1x32xf32>
      tpu.vector_store %arg24[%c0_85, %c0_86, %c0_87], %137 {strides = array<i32>} : memref<2x1x32xf32, #tpu.memory_space<vmem>>, vector<2x1x32xf32>,
      %cst_88 = arith.constant -1.000000e+30 : f32
      %139 = vector.broadcast %cst_88 : f32 to vector<2x1x1xf32>
      %c0_89 = arith.constant 0 : index
      %c0_90 = arith.constant 0 : index
      %c0_91 = arith.constant 0 : index
      %140 = vector.load %arg25[%c0_89, %c0_90, %c0_91] : memref<2x1x1xf32, #tpu.memory_space<vmem>>, vector<2x1x1xf32>
      tpu.vector_store %arg25[%c0_89, %c0_90, %c0_91], %139 {strides = array<i32>} : memref<2x1x1xf32, #tpu.memory_space<vmem>>, vector<2x1x1xf32>,
      %cst_92 = arith.constant 0.000000e+00 : f32
      %141 = vector.broadcast %cst_92 : f32 to vector<2x1x1xf32>
      %c0_93 = arith.constant 0 : index
      %c0_94 = arith.constant 0 : index
      %c0_95 = arith.constant 0 : index
      %142 = vector.load %arg26[%c0_93, %c0_94, %c0_95] : memref<2x1x1xf32, #tpu.memory_space<vmem>>, vector<2x1x1xf32>
      tpu.vector_store %arg26[%c0_93, %c0_94, %c0_95], %141 {strides = array<i32>} : memref<2x1x1xf32, #tpu.memory_space<vmem>>, vector<2x1x1xf32>,
      %cst_96 = arith.constant 0.000000e+00 : f32
      %143 = vector.broadcast %cst_96 : f32 to vector<2x1x32xf32>
      %c0_97 = arith.constant 0 : index
      %c0_98 = arith.constant 0 : index
      %c0_99 = arith.constant 0 : index
      %144 = vector.load %arg27[%c0_97, %c0_98, %c0_99] : memref<2x1x32xf32, #tpu.memory_space<vmem>>, vector<2x1x32xf32>
      tpu.vector_store %arg27[%c0_97, %c0_98, %c0_99], %143 {strides = array<i32>} : memref<2x1x32xf32, #tpu.memory_space<vmem>>, vector<2x1x32xf32>,
    } else {
    }
    %c0 = arith.constant 0 : index
    %c0_1 = arith.constant 0 : index
    %3 = vector.load %arg14[%c0, %c0_1] : memref<32x64xf32, #tpu.memory_space<vmem>>, vector<32x64xf32>
    %c0_2 = arith.constant 0 : index
    %c0_3 = arith.constant 0 : index
    %4 = vector.load %arg15[%c0_2, %c0_3] : memref<1x64xf32, #tpu.memory_space<vmem>>, vector<1x64xf32>
    %c0_4 = arith.constant 0 : index
    %c0_5 = arith.constant 0 : index
    %c0_6 = arith.constant 0 : index
    %5 = vector.load %arg2[%c0_4, %c0_5, %c0_6] : memref<2x8x32xf32, #tpu.memory_space<vmem>>, vector<2x8x32xf32>
    %6 = vector.shape_cast %5 : vector<2x8x32xf32> to vector<16x32xf32>
    %cst = arith.constant dense<0.000000e+00> : vector<16x64xf32>
    %7 = tpu.matmul %6, %3, %cst {dimension_numbers = #tpu.dot_dimension_numbers<[1], [0], [0], [1], [0, 0, 1, 1], [], []>} : vector<16x32xf32>, vector<32x64xf32>, vector<16x64xf32> -> vector<16x64xf32>
    %8 = vector.broadcast %4 : vector<1x64xf32> to vector<16x64xf32>
    %9 = arith.addf %7, %8 : vector<16x64xf32>
    %10 = vector.shape_cast %9 : vector<16x64xf32> to vector<2x8x64xf32>
    %11 = vector.extract_strided_slice %10 {offsets = [0, 0, 0], sizes = [2, 8, 32], strides = [1, 1, 1]} : vector<2x8x64xf32> to vector<2x8x32xf32>
    %12 = vector.extract_strided_slice %10 {offsets = [0, 0, 32], sizes = [2, 8, 32], strides = [1, 1, 1]} : vector<2x8x64xf32> to vector<2x8x32xf32>
    %c0_7 = arith.constant 0 : index
    %c0_8 = arith.constant 0 : index
    %c0_9 = arith.constant 0 : index
    %13 = vector.load %arg24[%c0_7, %c0_8, %c0_9] : memref<2x1x32xf32, #tpu.memory_space<vmem>>, vector<2x1x32xf32>
    "tpu.trace_start"() <{level = 10 : i32, message = "bhd,bsd->bhs"}> : () -> ()
    %cst_10 = arith.constant dense<0.000000e+00> : vector<2x1x8xf32>
    %14 = tpu.matmul %13, %11, %cst_10 {dimension_numbers = #tpu.dot_dimension_numbers<[2], [2], [1], [1], [0, 0, 0, 1, 1, 1], [0], [0]>} : vector<2x1x32xf32>, vector<2x8x32xf32>, vector<2x1x8xf32> -> vector<2x1x8xf32>
    "tpu.trace_stop"() : () -> ()
    %cst_11 = arith.constant 0.176776692 : f32
    %15 = vector.broadcast %cst_11 : f32 to vector<2x1x8xf32>
    %16 = arith.mulf %14, %15 : vector<2x1x8xf32>
    %c0_12 = arith.constant 0 : index
    %c0_13 = arith.constant 0 : index
    %17 = vector.load %arg3[%c0_12, %c0_13] : memref<2x8xf32, #tpu.memory_space<vmem>>, vector<2x8xf32>
    %18 = vector.shape_cast %17 : vector<2x8xf32> to vector<2x1x8xf32>
    %19 = arith.addf %16, %18 : vector<2x1x8xf32>
    %c0_14 = arith.constant 0 : index
    %c0_15 = arith.constant 0 : index
    %c0_16 = arith.constant 0 : index
    %20 = vector.load %arg25[%c0_14, %c0_15, %c0_16] : memref<2x1x1xf32, #tpu.memory_space<vmem>>, vector<2x1x1xf32>
    %cst_17 = arith.constant dense<0xFF800000> : vector<2x1xf32>
    %21 = vector.multi_reduction <maximumf>, %19, %cst_17 [2] : vector<2x1x8xf32> to vector<2x1xf32>
    %22 = vector.shape_cast %21 : vector<2x1xf32> to vector<2x1x1xf32>
    %23 = arith.maximumf %20, %22 : vector<2x1x1xf32>
    %24 = arith.subf %20, %23 : vector<2x1x1xf32>
    %25 = math.exp %24 : vector<2x1x1xf32>
    %26 = vector.broadcast %23 : vector<2x1x1xf32> to vector<2x1x8xf32>
    %27 = arith.subf %19, %26 : vector<2x1x8xf32>
    %28 = math.exp %27 : vector<2x1x8xf32>
    %c0_18 = arith.constant 0 : index
    %c0_19 = arith.constant 0 : index
    %c0_20 = arith.constant 0 : index
    %29 = vector.load %arg26[%c0_18, %c0_19, %c0_20] : memref<2x1x1xf32, #tpu.memory_space<vmem>>, vector<2x1x1xf32>
    %30 = arith.mulf %25, %29 : vector<2x1x1xf32>
    %cst_21 = arith.constant dense<0.000000e+00> : vector<2x1xf32>
    %31 = vector.multi_reduction <add>, %28, %cst_21 [2] : vector<2x1x8xf32> to vector<2x1xf32>
    %32 = vector.shape_cast %31 : vector<2x1xf32> to vector<2x1x1xf32>
    %33 = arith.addf %30, %32 : vector<2x1x1xf32>
    %c0_22 = arith.constant 0 : index
    %c0_23 = arith.constant 0 : index
    %c0_24 = arith.constant 0 : index
    %34 = vector.load %arg26[%c0_22, %c0_23, %c0_24] : memref<2x1x1xf32, #tpu.memory_space<vmem>>, vector<2x1x1xf32>
    tpu.vector_store %arg26[%c0_22, %c0_23, %c0_24], %33 {strides = array<i32>} : memref<2x1x1xf32, #tpu.memory_space<vmem>>, vector<2x1x1xf32>,
    %c0_25 = arith.constant 0 : index
    %c0_26 = arith.constant 0 : index
    %c0_27 = arith.constant 0 : index
    %35 = vector.load %arg27[%c0_25, %c0_26, %c0_27] : memref<2x1x32xf32, #tpu.memory_space<vmem>>, vector<2x1x32xf32>
    %36 = vector.broadcast %25 : vector<2x1x1xf32> to vector<2x1x32xf32>
    %37 = arith.mulf %36, %35 : vector<2x1x32xf32>
    "tpu.trace_start"() <{level = 10 : i32, message = "bhs,bsd->bhd"}> : () -> ()
    %cst_28 = arith.constant dense<0.000000e+00> : vector<2x1x32xf32>
    %38 = tpu.matmul %28, %12, %cst_28 {dimension_numbers = #tpu.dot_dimension_numbers<[2], [1], [1], [2], [0, 0, 0, 1, 1, 2], [0], [0]>} : vector<2x1x8xf32>, vector<2x8x32xf32>, vector<2x1x32xf32> -> vector<2x1x32xf32>
    "tpu.trace_stop"() : () -> ()
    %39 = arith.addf %37, %38 : vector<2x1x32xf32>
    %c0_29 = arith.constant 0 : index
    %c0_30 = arith.constant 0 : index
    %c0_31 = arith.constant 0 : index
    %40 = vector.load %arg27[%c0_29, %c0_30, %c0_31] : memref<2x1x32xf32, #tpu.memory_space<vmem>>, vector<2x1x32xf32>
    tpu.vector_store %arg27[%c0_29, %c0_30, %c0_31], %39 {strides = array<i32>} : memref<2x1x32xf32, #tpu.memory_space<vmem>>, vector<2x1x32xf32>,
    %c0_32 = arith.constant 0 : index
    %c0_33 = arith.constant 0 : index
    %c0_34 = arith.constant 0 : index
    %41 = vector.load %arg25[%c0_32, %c0_33, %c0_34] : memref<2x1x1xf32, #tpu.memory_space<vmem>>, vector<2x1x1xf32>
    tpu.vector_store %arg25[%c0_32, %c0_33, %c0_34], %23 {strides = array<i32>} : memref<2x1x1xf32, #tpu.memory_space<vmem>>, vector<2x1x1xf32>,
    %c0_i32_35 = arith.constant 0 : i32
    %42 = arith.cmpi eq, %arg1, %c0_i32_35 : i32
    %43 = arith.extui %42 : i1 to i32
    %c0_i32_36 = arith.constant 0 : i32
    %44 = arith.cmpi ne, %43, %c0_i32_36 : i32
    scf.if %44 {
      %c0_37 = arith.constant 0 : index
      %c0_38 = arith.constant 0 : index
      %c0_39 = arith.constant 0 : index
      %45 = vector.load %arg26[%c0_37, %c0_38, %c0_39] : memref<2x1x1xf32, #tpu.memory_space<vmem>>, vector<2x1x1xf32>
      %46 = tpu.reciprocal %45 {approx = true} : vector<2x1x1xf32> -> vector<2x1x1xf32>
      %c0_40 = arith.constant 0 : index
      %c0_41 = arith.constant 0 : index
      %c0_42 = arith.constant 0 : index
      %47 = vector.load %arg27[%c0_40, %c0_41, %c0_42] : memref<2x1x32xf32, #tpu.memory_space<vmem>>, vector<2x1x32xf32>
      %48 = vector.broadcast %46 : vector<2x1x1xf32> to vector<2x1x32xf32>
      %49 = arith.mulf %47, %48 : vector<2x1x32xf32>
      %c0_43 = arith.constant 0 : index
      %c0_44 = arith.constant 0 : index
      %50 = vector.load %arg7[%c0_43, %c0_44] : memref<1x32xf32, #tpu.memory_space<vmem>>, vector<1x32xf32>
      %51 = vector.shape_cast %50 : vector<1x32xf32> to vector<1x1x32xf32>
      %52 = vector.broadcast %51 : vector<1x1x32xf32> to vector<2x1x32xf32>
      %53 = arith.mulf %49, %52 : vector<2x1x32xf32>
      %cst_45 = arith.constant dense<0.000000e+00> : vector<2x32xf32>
      %54 = vector.multi_reduction <add>, %53, %cst_45 [1] : vector<2x1x32xf32> to vector<2x32xf32>
      %c0_46 = arith.constant 0 : index
      %c0_47 = arith.constant 0 : index
      %55 = vector.load %arg16[%c0_46, %c0_47] : memref<32x32xf32, #tpu.memory_space<vmem>>, vector<32x32xf32>
      %c0_48 = arith.constant 0 : index
      %c0_49 = arith.constant 0 : index
      %56 = vector.load %arg17[%c0_48, %c0_49] : memref<1x32xf32, #tpu.memory_space<vmem>>, vector<1x32xf32>
      %c0_50 = arith.constant 0 : index
      %c0_51 = arith.constant 0 : index
      %57 = vector.load %arg18[%c0_50, %c0_51] : memref<32x16xf32, #tpu.memory_space<vmem>>, vector<32x16xf32>
      %c0_52 = arith.constant 0 : index
      %c0_53 = arith.constant 0 : index
      %58 = vector.load %arg19[%c0_52, %c0_53] : memref<1x16xf32, #tpu.memory_space<vmem>>, vector<1x16xf32>
      %cst_54 = arith.constant dense<0.000000e+00> : vector<2x32xf32>
      %59 = tpu.matmul %54, %55, %cst_54 {dimension_numbers = #tpu.dot_dimension_numbers<[1], [0], [0], [1], [0, 0, 1, 1], [], []>} : vector<2x32xf32>, vector<32x32xf32>, vector<2x32xf32> -> vector<2x32xf32>
      %60 = vector.broadcast %56 : vector<1x32xf32> to vector<2x32xf32>
      %61 = arith.addf %59, %60 : vector<2x32xf32>
      %cst_55 = arith.constant dense<0.000000e+00> : vector<2x16xf32>
      %62 = tpu.matmul %61, %57, %cst_55 {dimension_numbers = #tpu.dot_dimension_numbers<[1], [0], [0], [1], [0, 0, 1, 1], [], []>} : vector<2x32xf32>, vector<32x16xf32>, vector<2x16xf32> -> vector<2x16xf32>
      %63 = vector.broadcast %58 : vector<1x16xf32> to vector<2x16xf32>
      %64 = arith.addf %62, %63 : vector<2x16xf32>
      %c0_56 = arith.constant 0 : index
      %c0_57 = arith.constant 0 : index
      %65 = vector.load %arg21[%c0_56, %c0_57] : memref<2x32xf32, #tpu.memory_space<vmem>>, vector<2x32xf32>
      tpu.vector_store %arg21[%c0_56, %c0_57], %61 {strides = array<i32>} : memref<2x32xf32, #tpu.memory_space<vmem>>, vector<2x32xf32>,
      %c0_58 = arith.constant 0 : index
      %c0_59 = arith.constant 0 : index
      %66 = vector.load %arg20[%c0_58, %c0_59] : memref<2x16xf32, #tpu.memory_space<vmem>>, vector<2x16xf32>
      tpu.vector_store %arg20[%c0_58, %c0_59], %64 {strides = array<i32>} : memref<2x16xf32, #tpu.memory_space<vmem>>, vector<2x16xf32>,
    } else {
    }
    return
  }
  func.func @transform_0(%arg0: i32, %arg1: i32) -> (i32, i32, i32) {
    %c0_i32 = arith.constant 0 : i32
    %c0_i32_0 = arith.constant 0 : i32
    return %arg0, %arg1, %c0_i32 : i32, i32, i32
  }
  func.func @transform_1(%arg0: i32, %arg1: i32) -> (i32, i32) {
    %c0_i32 = arith.constant 0 : i32
    return %arg0, %arg1 : i32, i32
  }
  func.func @transform_2(%arg0: i32, %arg1: i32) -> (i32, i32) {
    %c0_i32 = arith.constant 0 : i32
    %c0_i32_0 = arith.constant 0 : i32
    return %arg0, %c0_i32 : i32, i32
  }
  func.func @transform_3(%arg0: i32, %arg1: i32) -> (i32, i32, i32) {
    %c0_i32 = arith.constant 0 : i32
    %c0_i32_0 = arith.constant 0 : i32
    %c0_i32_1 = arith.constant 0 : i32
    return %c0_i32, %arg0, %c0_i32_0 : i32, i32, i32
  }
  func.func @transform_4(%arg0: i32, %arg1: i32) -> (i32, i32, i32) {
    %c0_i32 = arith.constant 0 : i32
    %c0_i32_0 = arith.constant 0 : i32
    %c0_i32_1 = arith.constant 0 : i32
    return %c0_i32, %arg0, %c0_i32_0 : i32, i32, i32
  }
  func.func @transform_5(%arg0: i32, %arg1: i32) -> (i32, i32) {
    %c0_i32 = arith.constant 0 : i32
    %c0_i32_0 = arith.constant 0 : i32
    %c0_i32_1 = arith.constant 0 : i32
    return %c0_i32, %c0_i32_0 : i32, i32
  }
  func.func @transform_6(%arg0: i32, %arg1: i32) -> (i32, i32) {
    %c0_i32 = arith.constant 0 : i32
    %c0_i32_0 = arith.constant 0 : i32
    %c0_i32_1 = arith.constant 0 : i32
    return %c0_i32, %c0_i32_0 : i32, i32
  }
  func.func @transform_7(%arg0: i32, %arg1: i32) -> (i32, i32) {
    %c0_i32 = arith.constant 0 : i32
    %c0_i32_0 = arith.constant 0 : i32
    %c0_i32_1 = arith.constant 0 : i32
    return %c0_i32, %c0_i32_0 : i32, i32
  }
  func.func @transform_8(%arg0: i32, %arg1: i32) -> (i32, i32) {
    %c0_i32 = arith.constant 0 : i32
    %c0_i32_0 = arith.constant 0 : i32
    %c0_i32_1 = arith.constant 0 : i32
    return %c0_i32, %c0_i32_0 : i32, i32
  }
  func.func @transform_9(%arg0: i32, %arg1: i32) -> (i32, i32) {
    %c0_i32 = arith.constant 0 : i32
    %c0_i32_0 = arith.constant 0 : i32
    %c0_i32_1 = arith.constant 0 : i32
    return %c0_i32, %c0_i32_0 : i32, i32
  }
  func.func @transform_10(%arg0: i32, %arg1: i32) -> (i32, i32) {
    %c0_i32 = arith.constant 0 : i32
    %c0_i32_0 = arith.constant 0 : i32
    %c0_i32_1 = arith.constant 0 : i32
    return %c0_i32, %c0_i32_0 : i32, i32
  }
  func.func @transform_11(%arg0: i32, %arg1: i32) -> (i32, i32) {
    %c0_i32 = arith.constant 0 : i32
    %c0_i32_0 = arith.constant 0 : i32
    %c0_i32_1 = arith.constant 0 : i32
    return %c0_i32, %c0_i32_0 : i32, i32
  }
  func.func @transform_12(%arg0: i32, %arg1: i32) -> (i32, i32) {
    %c0_i32 = arith.constant 0 : i32
    %c0_i32_0 = arith.constant 0 : i32
    %c0_i32_1 = arith.constant 0 : i32
    return %c0_i32, %c0_i32_0 : i32, i32
  }
  func.func @transform_13(%arg0: i32, %arg1: i32) -> (i32, i32) {
    %c0_i32 = arith.constant 0 : i32
    %c0_i32_0 = arith.constant 0 : i32
    %c0_i32_1 = arith.constant 0 : i32
    return %c0_i32, %c0_i32_0 : i32, i32
  }
  func.func @transform_14(%arg0: i32, %arg1: i32) -> (i32, i32) {
    %c0_i32 = arith.constant 0 : i32
    %c0_i32_0 = arith.constant 0 : i32
    %c0_i32_1 = arith.constant 0 : i32
    return %c0_i32, %c0_i32_0 : i32, i32
  }
  func.func @transform_15(%arg0: i32, %arg1: i32) -> (i32, i32) {
    %c0_i32 = arith.constant 0 : i32
    %c0_i32_0 = arith.constant 0 : i32
    %c0_i32_1 = arith.constant 0 : i32
    return %c0_i32, %c0_i32_0 : i32, i32
  }
  func.func @transform_16(%arg0: i32, %arg1: i32) -> (i32, i32) {
    %c0_i32 = arith.constant 0 : i32
    %c0_i32_0 = arith.constant 0 : i32
    %c0_i32_1 = arith.constant 0 : i32
    return %c0_i32, %c0_i32_0 : i32, i32
  }
  func.func @transform_17(%arg0: i32, %arg1: i32) -> (i32, i32) {
    %c0_i32 = arith.constant 0 : i32
    %c0_i32_0 = arith.constant 0 : i32
    %c0_i32_1 = arith.constant 0 : i32
    return %c0_i32, %c0_i32_0 : i32, i32
  }
  func.func @transform_18(%arg0: i32, %arg1: i32) -> (i32, i32) {
    %c0_i32 = arith.constant 0 : i32
    %c0_i32_0 = arith.constant 0 : i32
    return %arg0, %c0_i32 : i32, i32
  }
  func.func @transform_19(%arg0: i32, %arg1: i32) -> (i32, i32) {
    %c0_i32 = arith.constant 0 : i32
    %c0_i32_0 = arith.constant 0 : i32
    return %arg0, %c0_i32 : i32, i32
  }
  func.func @transform_20(%arg0: i32, %arg1: i32) -> (i32, i32, i32) {
    %c0_i32 = arith.constant 0 : i32
    %c0_i32_0 = arith.constant 0 : i32
    %c0_i32_1 = arith.constant 0 : i32
    return %c0_i32, %arg0, %c0_i32_0 : i32, i32, i32
  }
  func.func @transform_21(%arg0: i32, %arg1: i32) -> (i32, i32, i32) {
    %c0_i32 = arith.constant 0 : i32
    %c0_i32_0 = arith.constant 0 : i32
    %c0_i32_1 = arith.constant 0 : i32
    return %c0_i32, %arg0, %c0_i32_0 : i32, i32, i32
  }
}

</mosaic_0001>

<bundles_post_ra>
// kernel: tpu_custom_call.1
= control target key start
LH: loop header
LB: loop body
LE: loop exit
PB: predicated region body
PF: predicated region fallthrough
CT: control target
= control target key end

     0   :  { %s2355_s0 = inlined_call_operand.hbm [shape: f32[2,8,32], index: 0, kind: input, shape index: {}]   ;;  %s2356_s1 = inlined_call_operand.hbm [shape: f32[2,8], index: 1, kind: input, shape index: {}]   ;;  %s2357_s2 = inlined_call_operand.hbm [shape: f32[2,48], index: 2, kind: input, shape index: {}]   ;;  %s2358_s3 = inlined_call_operand.hbm [shape: f32[2,2,32], index: 3, kind: input, shape index: {}]   ;;  %s2359_s4 = inlined_call_operand.hbm [shape: f32[2,2,32], index: 4, kind: input, shape index: {}]   ;;  %s2360_s5 = inlined_call_operand.hbm [shape: f32[1,32], index: 5, kind: input, shape index: {}]   ;;  %s2361_s6 = inlined_call_operand.hbm [shape: f32[80,128], index: 6, kind: input, shape index: {}]   ;;  %s2362_s7 = inlined_call_operand.hbm [shape: f32[1,128], index: 7, kind: input, shape index: {}]   ;;  %s2363_s8 = inlined_call_operand.hbm [shape: f32[64,128], index: 8, kind: input, shape index: {}]   ;;  %s2364_s9 = inlined_call_operand.hbm [shape: f32[1,128], index: 9, kind: input, shape index: {}]   ;;  %s2365_s10 = inlined_call_operand.vmem [shape: f32[32,32], index: 10, kind: input, shape index: {}]   ;;  %s2366_s11 = inlined_call_operand.vmem [shape: f32[1,32], index: 11, kind: input, shape index: {}]   ;;  %s2367_s12 = inlined_call_operand.vmem [shape: f32[32,64], index: 12, kind: input, shape index: {}]   ;;  %s2368_s13 = inlined_call_operand.vmem [shape: f32[1,64], index: 13, kind: input, shape index: {}]   ;;  %s2369_s14 = inlined_call_operand.hbm [shape: f32[32,32], index: 14, kind: input, shape index: {}]   ;;  %s2370_s15 = inlined_call_operand.vmem [shape: f32[1,32], index: 15, kind: input, shape index: {}]   ;;  %s2371_s16 = inlined_call_operand.vmem [shape: f32[32,16], index: 16, kind: input, shape index: {}]   ;;  %s2372_s17 = inlined_call_operand.vmem [shape: f32[1,16], index: 17, kind: input, shape index: {}]   ;;  %s2373_s18 = inlined_call_operand.hbm [shape: f32[2,16], index: 18, kind: output, shape index: {0}]   ;;  %s2374_s19 = inlined_call_operand.hbm [shape: f32[2,32], index: 19, kind: output, shape index: {1}]   ;;  %s2375_s20 = inlined_call_operand.hbm [shape: f32[2,2,32], index: 20, kind: output, shape index: {2}]   ;;  %s2376_s21 = inlined_call_operand.hbm [shape: f32[2,2,32], index: 21, kind: output, shape index: {3}]  }
   0x1   :  { %2377 = sst [smem:[#allocation39_spill]] %s2355_s0 }
   0x2   :  { %2378 = sst [smem:[#allocation40_spill]] %s2356_s1 }
   0x3   :  { %2379 = sst [smem:[#allocation41_spill]] %s2357_s2 }
   0x4   :  { %2380 = sst [smem:[#allocation42_spill]] %s2358_s3 }
   0x5   :  { %2381 = sst [smem:[#allocation43_spill]] %s2359_s4 }
   0x6   :  { %2382 = sst [smem:[#allocation44_spill]] %s2360_s5 }
   0x7   :  { %27 = vsyncpa [#allocation7], 0 }
   0x8   :  { %28 = vsyncpa [#allocation10], 0 }
   0x9   :  { %29 = vsyncpa [#allocation13], 0 }
   0xa   :  { %30 = vsyncpa [#allocation16], 0 }
   0xb   :  { %31 = vsyncpa [#allocation19], 0 }
   0xc   :  { %32 = vsyncpa [#allocation22], 0 }
   0xd   :  { %33 = vsyncpa [#allocation8], 0 }
   0xe   :  { %34 = vsyncpa [#allocation26], 0 }
   0xf   :  { %35 = vsyncpa [#allocation29], 0  ;;  %s1964_s2 = smov [#allocation9]   ;;  %s1965_s26 = smov [#allocation12]  }
  0x10   :  { %s54_s25 = sshll.u32 %s1964_s2, 4  ;;  %s73_s27 = sshll.u32 %s1965_s26, 4  ;;  %s55_s25 = int_to_ptr.vmem [resolvable:$true] %s54_s25  ;;  %s74_s27 = int_to_ptr.vmem [resolvable:$true] %s73_s27 }
  0x11   :  { %s1654_s3 = scalar_lea.vmem %s55_s25, 32  ;;  %p1659_p1 = scmp.lt.s32.totalorder %s55_s25, %s55_s25 }
  0x12   :  { %p1655_p0 = scmp.ne.s32.totalorder %s55_s25, %s1654_s3  ;;  %p1660_p2 = scmp.lt.s32.totalorder %s1654_s3, %s1654_s3 }
  0x14   :  { %p1661_p3 = por %p1660_p2, %p1659_p1 }
  0x16   :  { %p1662_p4 = pnand %p1661_p3, %p1655_p0 }
  0x18   :  { %1665 = shalt.err (!%p1662_p4)
}
  0x19   :  { %s2383_s0 = sld [smem:[#allocation40_spill]]  ;;  %s1674_s4 = scalar_lea.vmem %s74_s27, 64 }
  0x1a   :  { %p1675_p5 = scmp.ne.s32.totalorder %s74_s27, %s1674_s4  ;;  %p1679_p6 = scmp.lt.s32.totalorder %s74_s27, %s74_s27 }
  0x1b   :  { %p1680_p7 = scmp.lt.s32.totalorder %s1674_s4, %s1674_s4 }
  0x1d   :  { %p1681_p8 = por %p1680_p7, %p1679_p6 }
  0x1f   :  { %57 = dma.hbm_to_vmem [thread:$0]  %s2383_s0, 32, %s55_s25, [#allocation10]  }
  0x20   :  { %p1682_p9 = pnand %p1681_p8, %p1675_p5 }
  0x22   :  { %1685 = shalt.err (!%p1682_p9)
}
  0x23   :  { %s1966_s30 = smov 32   ;;  %s1967_s5 = smov 2  }
  0x24   :  { %s2384_s1 = sld [smem:[#allocation42_spill]]  ;;  %s1968_s24 = smov [#allocation15]  }
  0x25   :  { %s98_s2 = sshll.u32 %s1968_s24, 4  ;;  %s1969_s26 = smov [#allocation18]   ;;  %s99_s2 = int_to_ptr.vmem [resolvable:$true] %s98_s2 }
  0x26   :  { %s120_s25 = sshll.u32 %s1969_s26, 4  ;;  %s1694_s3 = scalar_lea.vmem %s99_s2, 16  ;;  %s121_s25 = int_to_ptr.vmem [resolvable:$true] %s120_s25 }
  0x27   :  { %p1695_p10 = scmp.ne.s32.totalorder %s99_s2, %s1694_s3  ;;  %s1698_s28 = scalar_lea.vmem %s99_s2, 32 }
  0x28   :  { %p1699_p11 = scmp.lt.s32.totalorder %s99_s2, %s99_s2  ;;  %p1700_p12 = scmp.lt.s32.totalorder %s1698_s28, %s1694_s3 }
  0x2a   :  { %79 = dma.hbm_to_vmem [thread:$0]  %s2384_s1, 64, %s74_s27, [#allocation13], %s1966_s30, %s1966_s30, %s1967_s5  }
  0x2b   :  { %p1701_p13 = por %p1700_p12, %p1699_p11 }
  0x2d   :  { %p1702_p0 = pnand %p1701_p13, %p1695_p10 }
  0x2f   :  { %1705 = shalt.err (!%p1702_p0)
}
  0x30   :  { %s2385_s4 = sld [smem:[#allocation44_spill]]  ;;  %s1714_s22 = scalar_lea.vmem %s121_s25, 16 }
  0x31   :  { %p1715_p1 = scmp.ne.s32.totalorder %s121_s25, %s1714_s22  ;;  %s1718_s27 = scalar_lea.vmem %s121_s25, 32 }
  0x32   :  { %p1719_p2 = scmp.lt.s32.totalorder %s121_s25, %s121_s25  ;;  %p1720_p3 = scmp.lt.s32.totalorder %s1718_s27, %s1714_s22 }
  0x34   :  { %p1721_p4 = por %p1720_p3, %p1719_p2 }
  0x36   :  { %101 = dma.hbm_to_vmem [thread:$0]  %s2385_s4, 16, %s99_s2, [#allocation16]  }
  0x37   :  { %p1722_p5 = pnand %p1721_p4, %p1715_p1 }
  0x39   :  { %1725 = shalt.err (!%p1722_p5)
}
  0x3a   :  { %123 = dma.hbm_to_vmem [thread:$0]  %s2362_s7, 16, %s121_s25, [#allocation19]  }
  0x3b   :  { %s1970_s24 = smov [#allocation21]   ;;  %s1971_s3 = smov [#allocation6]  }
  0x3c   :  { %s142_s26 = sshll.u32 %s1970_s24, 4  ;;  %s41_s28 = sshll.u32 %s1971_s3, 4  ;;  %s143_s26 = int_to_ptr.vmem [resolvable:$true] %s142_s26  ;;  %s42_s28 = int_to_ptr.vmem [resolvable:$true] %s41_s28 }
  0x3d   :  { %s1734_s29 = scalar_lea.vmem %s143_s26, 16  ;;  %s1738_s2 = scalar_lea.vmem %s143_s26, 32 }
  0x3e   :  { %p1735_p6 = scmp.ne.s32.totalorder %s143_s26, %s1734_s29  ;;  %p1739_p7 = scmp.lt.s32.totalorder %s143_s26, %s143_s26 }
  0x3f   :  { %p1740_p8 = scmp.lt.s32.totalorder %s1738_s2, %s1734_s29 }
  0x41   :  { %p1741_p9 = por %p1740_p8, %p1739_p7 }
  0x43   :  { %p1742_p10 = pnand %p1741_p9, %p1735_p6 }
  0x45   :  { %1745 = shalt.err (!%p1742_p10)
}
  0x46   :  { %145 = dma.hbm_to_vmem [thread:$0]  %s2364_s9, 16, %s143_s26, [#allocation22]  }
  0x47   :  { %s1754_s22 = scalar_lea.vmem %s42_s28, 256  ;;  %p1759_p12 = scmp.lt.s32.totalorder %s42_s28, %s42_s28 }
  0x48   :  { %p1755_p11 = scmp.ne.s32.totalorder %s42_s28, %s1754_s22  ;;  %p1760_p13 = scmp.lt.s32.totalorder %s1754_s22, %s1754_s22 }
  0x4a   :  { %p1761_p0 = por %p1760_p13, %p1759_p12 }
  0x4c   :  { %p1762_p1 = pnand %p1761_p0, %p1755_p11 }
  0x4e   :  { %1765 = shalt.err (!%p1762_p1)
}
  0x4f   :  { %s1972_s7 = smov 128   ;;  %s1973_s25 = smov 8  }
  0x50   :  { %s2386_s1 = sld [smem:[#allocation39_spill]]  ;;  %s1974_s24 = smov [#allocation11]  }
  0x51   :  { %s64_s3 = sshll.u32 %s1974_s24, 4  ;;  %s1975_s29 = smov [#allocation14]   ;;  %s65_s3 = int_to_ptr.vmem [resolvable:$true] %s64_s3 }
  0x52   :  { %s85_s9 = sshll.u32 %s1975_s29, 4  ;;  %s1774_s26 = scalar_lea.vmem %s65_s3, 32  ;;  %s86_s9 = int_to_ptr.vmem [resolvable:$true] %s85_s9 }
  0x53   :  { %p1775_p2 = scmp.ne.s32.totalorder %s65_s3, %s1774_s26  ;;  %p1779_p3 = scmp.lt.s32.totalorder %s65_s3, %s65_s3 }
  0x54   :  { %p1780_p4 = scmp.lt.s32.totalorder %s1774_s26, %s1774_s26 }
  0x56   :  { %47 = dma.hbm_to_vmem [thread:$0]  %s2386_s1, 256, %s42_s28, [#allocation7], %s1972_s7, %s1972_s7, %s1973_s25  }
  0x57   :  { %p1781_p5 = por %p1780_p4, %p1779_p3 }
  0x59   :  { %p1782_p6 = pnand %p1781_p5, %p1775_p2 }
  0x5b   :  { %1785 = shalt.err (!%p1782_p6)
}
  0x5c   :  { %s2387_s4 = sld [smem:[#allocation41_spill]]  ;;  %s1794_s22 = scalar_lea.vmem %s86_s9, 64 }
  0x5d   :  { %p1795_p7 = scmp.ne.s32.totalorder %s86_s9, %s1794_s22  ;;  %p1799_p8 = scmp.lt.s32.totalorder %s86_s9, %s86_s9 }
  0x5e   :  { %p1800_p9 = scmp.lt.s32.totalorder %s1794_s22, %s1794_s22 }
  0x60   :  { %p1801_p10 = por %p1800_p9, %p1799_p8 }
  0x62   :  { %67 = dma.hbm_to_vmem [thread:$0]  %s2387_s4, 32, %s65_s3, [#allocation10]  }
  0x63   :  { %p1802_p11 = pnand %p1801_p10, %p1795_p7 }
  0x65   :  { %1805 = shalt.err (!%p1802_p11)
}
  0x66   :  { %s2388_s23 = sld [smem:[#allocation43_spill]]  ;;  %s1976_s1 = smov [#allocation17]  }
  0x67   :  { %s107_s24 = sshll.u32 %s1976_s1, 4  ;;  %s1977_s29 = smov [#allocation20]   ;;  %s108_s24 = int_to_ptr.vmem [resolvable:$true] %s107_s24 }
  0x68   :  { %s129_s26 = sshll.u32 %s1977_s29, 4  ;;  %s1814_s3 = scalar_lea.vmem %s108_s24, 1280  ;;  %s130_s26 = int_to_ptr.vmem [resolvable:$true] %s129_s26 }
  0x69   :  { %p1815_p12 = scmp.ne.s32.totalorder %s108_s24, %s1814_s3  ;;  %p1819_p13 = scmp.lt.s32.totalorder %s108_s24, %s108_s24 }
  0x6a   :  { %p1820_p0 = scmp.lt.s32.totalorder %s1814_s3, %s1814_s3 }
  0x6c   :  { %91 = dma.hbm_to_vmem [thread:$0]  %s2388_s23, 64, %s86_s9, [#allocation13], %s1966_s30, %s1966_s30, %s1967_s5  }
  0x6d   :  { %p1821_p1 = por %p1820_p0, %p1819_p13 }
  0x6f   :  { %p1822_p2 = pnand %p1821_p1, %p1815_p12 }
  0x71   :  { %1825 = shalt.err (!%p1822_p2)
}
  0x72   :  { %113 = dma.hbm_to_vmem [thread:$0]  %s2361_s6, 1280, %s108_s24, [#allocation16], %s1972_s7, %s1972_s7, %s1973_s25  }
  0x73   :  { %s1834_s9 = scalar_lea.vmem %s130_s26, 1024  ;;  %p1839_p4 = scmp.lt.s32.totalorder %s130_s26, %s130_s26 }
  0x74   :  { %p1835_p3 = scmp.ne.s32.totalorder %s130_s26, %s1834_s9  ;;  %p1840_p5 = scmp.lt.s32.totalorder %s1834_s9, %s1834_s9 }
  0x76   :  { %p1841_p6 = por %p1840_p5, %p1839_p4 }
  0x78   :  { %p1842_p7 = pnand %p1841_p6, %p1835_p3 }
  0x7a   :  { %1845 = shalt.err (!%p1842_p7)
}
  0x7b   :  { %135 = dma.hbm_to_vmem [thread:$0]  %s2363_s8, 1024, %s130_s26, [#allocation19], %s1972_s7, %s1972_s7, %s1973_s25  }
  0x7c   :  { %s1978_s28 = smov [#allocation23]  }
  0x7d   :  { %s159_s27 = sshll.u32 %s1978_s28, 4  ;;  %s160_s27 = int_to_ptr.vmem [resolvable:$true] %s159_s27 }
  0x7e   :  { %s1854_s23 = scalar_lea.vmem %s160_s27, 512  ;;  %p1859_p9 = scmp.lt.s32.totalorder %s160_s27, %s160_s27 }
  0x7f   :  { %p1855_p8 = scmp.ne.s32.totalorder %s160_s27, %s1854_s23  ;;  %p1860_p10 = scmp.lt.s32.totalorder %s1854_s23, %s1854_s23 }
  0x81   :  { %p1861_p11 = por %p1860_p10, %p1859_p9 }
  0x83   :  { %p1862_p12 = pnand %p1861_p11, %p1855_p8 }
  0x85   :  { %1865 = shalt.err (!%p1862_p12)
}
  0x86   :  { %165 = dma.hbm_to_vmem [thread:$0]  %s2369_s14, 512, %s160_s27, [#allocation22], %s1972_s7, %s1972_s7, %s1973_s25  }
  0x87   :  { %1946 = dma.done.wait [#allocation7], 256  }
  0x88   :  { %1947 = vsyncadd [#allocation7], 4294967040 }
  0x89   :  { %1948 = dma.done.wait [#allocation10], 64  }
  0x8a   :  { %1949 = vsyncadd [#allocation10], 4294967232 }
  0x8b   :  { %1950 = dma.done.wait [#allocation13], 128  }
  0x8c   :  { %1951 = vsyncadd [#allocation13], 4294967168 }
  0x8d   :  { %1952 = dma.done.wait [#allocation16], 1296  }
  0x8e   :  { %1953 = vsyncadd [#allocation16], 4294966000 }
  0x8f   :  { %1954 = dma.done.wait [#allocation19], 1040  }
  0x90   :  { %1955 = vsyncadd [#allocation19], 4294966256 }
  0x91   :  { %1956 = dma.done.wait [#allocation22], 528  }
  0x92   :  { %1957 = vsyncadd [#allocation22], 4294966768  ;;  %v1979_v0 = vmov 0.0   ;;  %vm1980_vm0 = vmmov 0   ;;  %v221_v1 = vld [vmem:[#allocation12] sm:$0x3] }
  0x93   :  { %1483 = vmatprep.subr.mxu0 %v1979_v0  ;;  %1503 = vmatprep.mubr.msk.f32.mxu0 %vm1980_vm0, %v1979_v0  ;;  %v219_v2 = vld [vmem:[#allocation17 + $0x48] sm:$0xff]  ;;  %v218_v3 = vld [vmem:[#allocation17 + $0x40] sm:$0xff]  ;;  %s1981_s8 = smov 48   ;;  %v217_v4 = vld [vmem:[#allocation17 + $0x38] sm:$0xff]  ;;  %vm227_vm1 = vcmask 392192   ;;  %vm235_vm2 = vcmask 654336  }
  0x94   :  { %1506 = vmatprep.subr.mxu1 %v1979_v0  ;;  %1522 = vmatprep.mubr.msk.f32.mxu1 %vm1980_vm0, %v1979_v0  ;;  %v216_v5 = vld [vmem:[#allocation17 + $0x30] sm:$0xff]  ;;  %v222_v6 = vld [vmem:[#allocation14] sm:$0x3]  ;;  %v215_v7 = vld [vmem:[#allocation17 + $0x28] sm:$0xff]  ;;  %s1982_s14 = smov 64   ;;  %vm341_vm3 = vcmask 254976  }
  0x95   :  { %224 = vrot.lane.b32.xlu0 %v221_v1, %s1981_s8  ;;  %1484 = vmatpush3.msra.mxu0 %v219_v2  ;;  %v214_v8 = vld [vmem:[#allocation17 + $0x20] sm:$0xff]  ;;  %v213_v9 = vld [vmem:[#allocation17 + $0x18] sm:$0xff]  ;;  %v212_v10 = vld [vmem:[#allocation17 + $0x10] sm:$0xff]  ;;  %vm365_vm4 = vcmask 261120   ;;  %vm373_vm5 = vcmask 523264   ;;  %vm598_vm6 = vcmask 253952  }
  0x96   :  { %1485 = vmatprep.subr.mxu0 %v1979_v0  ;;  %317 = vrot.lane.b32.xlu1 %v222_v6, %s1966_s30  ;;  %v211_v11 = vld [vmem:[#allocation17 + $0x8] sm:$0xff]  ;;  %v210_v12 = vld [vmem:[#allocation17] sm:$0xff]  ;;  %v209_v13 = vld [vmem:[#allocation11] sm:$0x3]  ;;  %606 = vst.msk [vmem:[#allocation5] sm:$0x1] %vm598_vm6, %v1979_v0 }
  0x97   :  { %1486 = vmatpush3.msra.mxu0 %v218_v3  ;;  %v1412_v16 = vld [vmem:[#allocation18] ss:$0 sm:$0xff]  ;;  %v354_v32 = vld [vmem:[#allocation20 + $0x30] sm:$0xff]  ;;  %v353_v33 = vld [vmem:[#allocation20 + $0x28] sm:$0xff]  ;;  %607 = vst.msk [vmem:[#allocation5 + $0x1] sm:$0x1] %vm598_vm6, %v1979_v0 }
  0x98   :  { %1487 = vmatprep.subr.mxu0 %v1979_v0  ;;  %v355_v31 = vld [vmem:[#allocation20 + $0x38] sm:$0xff]  ;;  %v352_v34 = vld [vmem:[#allocation20 + $0x20] sm:$0xff]  ;;  %v350_v36 = vld [vmem:[#allocation20 + $0x10] sm:$0xff]  ;;  %vm601_vm7 = vcmask 0   ;;  %vm889_vm8 = vcmask 57344   ;;  %vm968_vm9 = vcmask 64512  }
  0x99   :  { %1488 = vmatpush3.msra.mxu0 %v217_v4  ;;  %1507 = vmatpush3.msra.mxu1 %v355_v31  ;;  %v351_v35 = vld [vmem:[#allocation20 + $0x18] sm:$0xff]  ;;  %v349_v38 = vld [vmem:[#allocation20 + $0x8] sm:$0xff]  ;;  %v358_v39 = vld [vmem:[#allocation12 + $0x2] sm:$0x3]  ;;  %604 = vst.msk [vmem:[#allocation4] sm:$0x1] %vm601_vm7, %v1979_v0 }
  0x9a   :  { %1489 = vmatprep.subr.mxu0 %v1979_v0  ;;  %1508 = vmatprep.subr.mxu1 %v1979_v0  ;;  %v348_v40 = vld [vmem:[#allocation20] sm:$0xff]  ;;  %v360_v41 = vld [vmem:[#allocation14 + $0x2] sm:$0x3]  ;;  %v489_v63 = vld [vmem:[%s2365_s10 + $0x10] sm:$0xff]  ;;  %605 = vst.msk [vmem:[#allocation4 + $0x1] sm:$0x1] %vm601_vm7, %v1979_v0 }
  0x9b   :  { %1490 = vmatpush3.msra.mxu0 %v216_v5  ;;  %1509 = vmatpush3.msra.mxu1 %v354_v32  ;;  %v1415_v47 = vld [vmem:[#allocation21] ss:$0 sm:$0xff]  ;;  %v488_v2 = vld [vmem:[%s2365_s10 + $0x8] sm:$0xff]  ;;  %v487_v3 = vld [vmem:[%s2365_s10] sm:$0xff]  ;;  %s1987_s4 = smov [#allocation25]  }
  0x9c   :  { %1491 = vmatprep.subr.mxu0 %v1979_v0  ;;  %1510 = vmatprep.subr.mxu1 %v1979_v0  ;;  %v490_v62 = vld [vmem:[%s2365_s10 + $0x18] sm:$0xff]  ;;  %v610_v5 = vld [vmem:[%s2367_s12 + $0x10] sm:$0xff]  ;;  %v609_v6 = vld [vmem:[%s2367_s12 + $0x8] sm:$0xff]  ;;  %s1363_s22 = sshll.u32 %s1987_s4, 4  ;;  %s1364_s22 = int_to_ptr.vmem [resolvable:$true] %s1363_s22 }
  0x9d   :  { %1492 = vmatpush3.msra.mxu0 %v215_v7  ;;  %1511 = vmatpush3.msra.mxu1 %v353_v33  ;;  %v611_v1 = vld [vmem:[%s2367_s12 + $0x18] sm:$0xff]  ;;  %v613_v7 = vld [vmem:[#allocation6] sm:$0xff]  ;;  %s1866_s28 = scalar_lea.vmem %s1364_s22, 32  ;;  %p1871_p0 = scmp.lt.s32.totalorder %s1364_s22, %s1364_s22 }
  0x9e   :  { %1493 = vmatprep.subr.mxu0 %v1979_v0  ;;  %1512 = vmatprep.subr.mxu1 %v1979_v0  ;;  %p1867_p13 = scmp.ne.s32.totalorder %s1364_s22, %s1866_s28  ;;  %p1872_p1 = scmp.lt.s32.totalorder %s1866_s28, %s1866_s28 }
  0x9f   :  { %1494 = vmatpush3.msra.mxu0 %v214_v8  ;;  %1513 = vmatpush3.msra.mxu1 %v352_v34  ;;  %v608_v8 = vld [vmem:[%s2367_s12] sm:$0xff] }
  0xa0   :  { %1495 = vmatprep.subr.mxu0 %v1979_v0  ;;  %1514 = vmatprep.subr.mxu1 %v1979_v0  ;;  %p1873_p2 = por %p1872_p1, %p1871_p0 }
  0xa1   :  { %1496 = vmatpush3.msra.mxu0 %v213_v9  ;;  %1515 = vmatpush3.msra.mxu1 %v351_v35  ;;  %v614_v9 = vld [vmem:[#allocation6 + $0x8] sm:$0xff] }
  0xa2   :  { %1497 = vmatprep.subr.mxu0 %v1979_v0  ;;  %1516 = vmatprep.subr.mxu1 %v1979_v0  ;;  %p1874_p3 = pnand %p1873_p2, %p1867_p13 }
  0xa3   :  { %1498 = vmatpush3.msra.mxu0 %v212_v10  ;;  %1517 = vmatpush3.msra.mxu1 %v350_v36 }
  0xa4   :  { %1499 = vmatprep.subr.mxu0 %v1979_v0  ;;  %1518 = vmatprep.subr.mxu1 %v1979_v0 }
  0xa5   :  { %1500 = vmatpush3.msra.mxu0 %v211_v11  ;;  %1519 = vmatpush3.msra.mxu1 %v349_v38  ;;  %v1984_v38 = vmov -1e+30  }
  0xa6   :  { %1501 = vmatprep.subr.mxu0 %v1979_v0  ;;  %1520 = vmatprep.subr.mxu1 %v1979_v0  ;;  %602 = vst.msk [vmem:[#allocation3] sm:$0x1] %vm601_vm7, %v1984_v38  ;;  %603 = vst.msk [vmem:[#allocation3 + $0x1] sm:$0x1] %vm601_vm7, %v1984_v38  ;;  %v1166_v38 = vld [vmem:[%s2371_s16 + $0x10] sm:$0xff] }
  0xa7   :  { %1502 = vmatpush3.msra.mxu0 %v210_v12  ;;  %1521 = vmatpush3.msra.mxu1 %v348_v40 }
  0xa8   :  { %1525 = vmatprep.subr.mxu1 %v1979_v0  ;;  %1536 = vmatprep.subr.mxu0 %v611_v1 }
 0x107   :  { %v225_v14 = vpop.permute.xlu0 %224 }
 0x108   :  { %v228_v15 = vsel %vm227_vm1, %v209_v13, %v225_v14  ;;  %v318_v27 = vpop.permute.xlu1 %317  ;;  %v1420_v14 = vld [vmem:[%s2368_s13] ss:$0 sm:$0xff] }
 0x109   :  { %1504 = vmatmul.mubr.msk.f32.vlgmr.msra.gmra.mxu0 %vm235_vm2, %v228_v15 }
 0x10a   :  { %1537 = vmatpush3.msra.mxu0 %v611_v1  ;;  %1544 = vmatprep.mubr.msk.f32.mxu0 %vm365_vm4, %v613_v7 }
 0x10b   :  { %1538 = vmatprep.subr.mxu0 %v610_v5 }
 0x10c   :  { %1539 = vmatpush3.msra.mxu0 %v610_v5 }
 0x10d   :  { %1540 = vmatprep.subr.mxu0 %v609_v6 }
 0x10e   :  { %1541 = vmatpush3.msra.mxu0 %v609_v6 }
 0x10f   :  { %1542 = vmatprep.subr.mxu0 %v608_v8 }
 0x110   :  { %1543 = vmatpush3.msra.mxu0 %v608_v8 }
 0x111   :  { %1545 = vmatmul.mubr.msk.f32.vlgmr.msra.gmra.mxu0 %vm365_vm4, %v614_v9  ;;  %1552 = vmatprep.subr.mxu0 %v1979_v0 }
 0x112   :  { %1554 = vmatprep.mubr.msk.f32.mxu0 %vm1980_vm0, %v1979_v0 }
 0x1c9   :  { %v305_v17 = vpop.f32.mrf.mxu0 }
 0x1ca   :  { %v306_v18 = vadd.f32 %v1412_v16, %v305_v17 }
 0x1cb   :  { %v1505_v19 = vpop.f32.mrf.mxu0 }
 0x1cc   :  { %1618 = vtanh.f32 %v306_v18  ;;  %v1414_v21 = vmul.f32 -1.442695, %v306_v18  ;;  %v1983_v18 = vmov 1966171168  }
 0x1cd   :  { %v572_v19 = vunpack.c.l.s4 %v1983_v18 }
 0x1ce   :  { %1620 = vpow2.f32 %v1414_v21 }
 0x1cf   :  { %v573_v21 = vunpack.c.0.s8 %v572_v19  ;;  %v928_v19 = vld [vmem:[#allocation4] sm:$0x1] }
 0x1d1   :  { %v1546_v13 = vpop.f32.mrf.mxu0 }
 0x1d2   :  { %v2240_v16 = vadd.f32 %v1546_v13, %v1420_v14 }
 0x1d3   :  { %v694_v15 = vpop.f32.mrf.mxu0 }
 0x1d4   :  { %v2242_v17 = vadd.f32 %v1420_v14, %v694_v15  ;;  %1553 = vmatpush3.xpose.msk.msra.mxu0 %vm365_vm4, %v2240_v16 }
 0x1d5   :  { %1562 = vmatprep.subr.mxu0 %v1979_v0 }
 0x1d9   :  { %v1619_v20 = vpop.eup %1618 }
 0x1da   :  { %322 = vrot.lane.b32.xlu0 %v1619_v20, %s1982_s14  ;;  %v574_v20 = vlaneseq }
 0x1db   :  { %v1621_v22 = vpop.eup %1620 }
 0x1dc   :  { %v312_v23 = vadd.f32 1.0, %v1621_v22  ;;  %v575_v22 = vshrl.u32 %v574_v20, 7  ;;  %v929_v20 = vld [vmem:[#allocation4 + $0x1] sm:$0x1] }
 0x1de   :  { %1622 = vrcp.f32 %v312_v23  ;;  %v1418_v23 = vld [vmem:[%s2366_s11] ss:$0 sm:$0xff]  ;;  %s1986_s11 = smov 96  }
 0x1eb   :  { %v1623_v24 = vpop.eup %1622 }
 0x1ec   :  { %v320_v28 = vmul.f32 %v1623_v24, %v318_v27 }
 0x24c   :  { %v323_v25 = vpop.permute.xlu0 %322 }
 0x24d   :  { %v325_v26 = vmul.f32 %v1623_v24, %v323_v25 }
 0x24f   :  { %327 = vrot.lane.b32.xlu1 %v325_v26, %s1966_s30 }
 0x2c1   :  { %v328_v29 = vpop.permute.xlu1 %327 }
 0x2c2   :  { %v2170_v30 = vadd.f32 %v328_v29, %v320_v28  ;;  %v595_v29 = vld [vmem:[#allocation15] sm:$0x1] }
 0x2c4   :  { %1624 = vtanh.f32 %v2170_v30 }
 0x2d1   :  { %v1625_v37 = vpop.eup %1624 }
 0x2d2   :  { %333 = vrot.lane.b32.xlu0 %v1625_v37, %s1982_s14 }
 0x2d6   :  { %362 = vrot.lane.b32.xlu0 %v358_v39, %s1966_s30  ;;  %v1427_v39 = vld.sshfl [vmem:[#allocation9] sm:$0x11 pattern:$0x75316420] }
 0x2d7   :  { %v868_v40 = vcombine.high %v1427_v39, %v1427_v39 }
 0x2da   :  { %455 = vrot.lane.b32.xlu0 %v360_v41, %s1966_s30 }
 0x344   :  { %v334_v42 = vpop.permute.xlu0 %333 }
 0x345   :  { %v336_v43 = vmul.f32 %v1623_v24, %v334_v42  ;;  %v2253_v24 = vsub.s32 %v573_v21, %v575_v22 }
 0x347   :  { %338 = vrot.lane.b32.xlu1 %v336_v43, %s1966_s30  ;;  %v875_v41 = vrot.slane %v1427_v39, %v2253_v24 }
 0x348   :  { %v363_v44 = vpop.permute.xlu0 %362 }
 0x34c   :  { %v456_v58 = vpop.permute.xlu0 %455 }
 0x3b9   :  { %v339_v45 = vpop.permute.xlu1 %338 }
 0x3ba   :  { %342 = vst.msk [vmem:[#allocation27] sm:$0x3] %vm341_vm3, %v339_v45  ;;  %v366_v46 = vsel %vm365_vm4, %v339_v45, %v363_v44  ;;  %v882_v44 = vrot.slane %v868_v40, %v2253_v24 }
 0x3bb   :  { %1523 = vmatmul.mubr.msk.f32.vlgmr.msra.gmra.mxu1 %vm373_vm5, %v366_v46 }
 0x3bc   :  { %1533 = vmatprep.mubr.msk.f32.mxu1 %vm1980_vm0, %v1979_v0  ;;  %1526 = vmatpush3.msra.mxu1 %v490_v62 }
 0x3bd   :  { %1527 = vmatprep.subr.mxu1 %v1979_v0 }
 0x3be   :  { %1528 = vmatpush3.msra.mxu1 %v489_v63  ;;  %v2282_v63 = vsub.s32 0, %v575_v22 }
 0x3bf   :  { %1529 = vmatprep.subr.mxu1 %v1979_v0 }
 0x3c0   :  { %1530 = vmatpush3.msra.mxu1 %v488_v2 }
 0x3c1   :  { %1531 = vmatprep.subr.mxu1 %v1979_v0 }
 0x3c2   :  { %1532 = vmatpush3.msra.mxu1 %v487_v3 }
 0x3c3   :  { %1547 = vmatprep.subr.mxu1 %v1979_v0 }
 0x47b   :  { %v443_v48 = vpop.f32.mrf.mxu1 }
 0x47c   :  { %v444_v49 = vadd.f32 %v1415_v47, %v443_v48 }
 0x47d   :  { %v1524_v50 = vpop.f32.mrf.mxu1 }
 0x47e   :  { %1626 = vtanh.f32 %v444_v49  ;;  %v1417_v52 = vmul.f32 -1.442695, %v444_v49 }
 0x480   :  { %1628 = vpow2.f32 %v1417_v52 }
 0x48b   :  { %v1627_v51 = vpop.eup %1626 }
 0x48c   :  { %460 = vrot.lane.b32.xlu1 %v1627_v51, %s1982_s14 }
 0x48d   :  { %v1629_v53 = vpop.eup %1628 }
 0x48e   :  { %v450_v54 = vadd.f32 1.0, %v1629_v53  ;;  %v1985_v53 = vmov 0  }
 0x48f   :  { %1616 = vset.pattern.permute.xlu0 %v1985_v53  ;;  %1617 = vset.pattern.permute.xlu1 %v1985_v53 }
 0x490   :  { %1630 = vrcp.f32 %v450_v54  ;;  %v887_v54 = vld [vmem:[#allocation3] sm:$0x1] }
 0x49d   :  { %v1631_v55 = vpop.eup %1630 }
 0x49e   :  { %v458_v59 = vmul.f32 %v1631_v55, %v456_v58 }
 0x4fe   :  { %v461_v56 = vpop.permute.xlu1 %460 }
 0x4ff   :  { %v463_v57 = vmul.f32 %v1631_v55, %v461_v56  ;;  %v888_v56 = vld [vmem:[#allocation3 + $0x1] sm:$0x1] }
 0x501   :  { %465 = vrot.lane.b32.xlu1 %v463_v57, %s1966_s30 }
 0x573   :  { %v466_v60 = vpop.permute.xlu1 %465 }
 0x574   :  { %v2191_v61 = vadd.f32 %v466_v60, %v458_v59 }
 0x576   :  { %1632 = vtanh.f32 %v2191_v61 }
 0x583   :  { %v1633_v4 = vpop.eup %1632 }
 0x584   :  { %471 = vrot.lane.b32.xlu0 %v1633_v4, %s1982_s14 }
 0x5f6   :  { %v472_v10 = vpop.permute.xlu0 %471 }
 0x5f7   :  { %v474_v11 = vmul.f32 %v1631_v55, %v472_v10 }
 0x5f9   :  { %476 = vrot.lane.b32.xlu1 %v474_v11, %s1966_s30 }
 0x66b   :  { %v477_v12 = vpop.permute.xlu1 %476 }
 0x66c   :  { %480 = vst.msk [vmem:[#allocation27 + $0x2] sm:$0x3] %vm341_vm3, %v477_v12  ;;  %1534 = vmatmul.mubr.msk.f32.vlgmr.msra.gmra.mxu1 %vm365_vm4, %v477_v12 }
 0x66d   :  { %1549 = vmatprep.mubr.msk.f32.mxu1 %vm1980_vm0, %v1979_v0  ;;  %1548 = vmatpush3.xpose.msk.msra.mxu1 %vm365_vm4, %v2242_v17 }
 0x66e   :  { %1557 = vmatprep.subr.mxu1 %v1979_v0 }
 0x72c   :  { %v566_v25 = vpop.f32.mrf.mxu1 }
 0x72d   :  { %v567_v26 = vadd.f32 %v1418_v23, %v566_v25 }
 0x72e   :  { %v1535_v27 = vpop.f32.mrf.mxu1 }
 0x72f   :  { %v577_v28 = vrot.slane %v567_v26, %v2253_v24 }
 0x731   :  { %v578_v31 = vcombine.high %v577_v28, %v577_v28  ;;  %v585_v32 = vrot.slane %v577_v28, %v2253_v24 }
 0x733   :  { %v592_v33 = vrot.slane %v578_v31, %v2253_v24  ;;  %v596_v34 = vmul.f32 %v595_v29, %v585_v32 }
 0x735   :  { %v597_v35 = vmul.f32 %v595_v29, %v592_v33  ;;  %599 = vst.msk [vmem:[#allocation2] sm:$0x1] %vm598_vm6, %v596_v34  ;;  %v1162_v33 = vld [vmem:[#allocation23 + $0x18] sm:$0xff]  ;;  %v1161_v34 = vld [vmem:[#allocation23 + $0x10] sm:$0xff] }
 0x737   :  { %600 = vst.msk [vmem:[#allocation2 + $0x1] sm:$0x1] %vm598_vm6, %v597_v35  ;;  %v1160_v35 = vld [vmem:[#allocation23 + $0x8] sm:$0xff] }
 0x73c   :  { %v703_v36 = vld [vmem:[#allocation2] sm:$0x1] }
 0x73d   :  { %1550 = vmatmul.mubr.msk.f32.vlgmr.msra.gmra.mxu1 %vm365_vm4, %v703_v36  ;;  %v1159_v36 = vld [vmem:[#allocation23] sm:$0xff] }
 0x73e   :  { %v704_v37 = vld [vmem:[#allocation2 + $0x1] sm:$0x1]  ;;  %1559 = vmatprep.mubr.msk.f32.mxu1 %vm1980_vm0, %v1979_v0 }
 0x73f   :  { %1555 = vmatmul.mubr.msk.f32.vlgmr.msra.gmra.mxu0 %vm365_vm4, %v704_v37  ;;  %v1167_v37 = vld [vmem:[%s2371_s16 + $0x18] sm:$0xff] }
 0x740   :  { %1564 = vmatprep.mubr.msk.f32.mxu0 %vm1980_vm0, %v1979_v0 }
 0x7fd   :  { %v777_v42 = vpop.f32.mrf.mxu1 }
 0x7fe   :  { %v857_v43 = vmul.f32 0.17677669, %v777_v42  ;;  %v944_v42 = vld [vmem:[#allocation5 + $0x1] sm:$0x1] }
 0x7ff   :  { %v1551_v45 = vpop.f32.mrf.mxu1  ;;  %v853_v46 = vpop.f32.mrf.mxu0 }
 0x800   :  { %v858_v47 = vmul.f32 0.17677669, %v853_v46  ;;  %v885_v48 = vadd.f32 %v875_v41, %v857_v43  ;;  %v943_v41 = vld [vmem:[#allocation5] sm:$0x1] }
 0x801   :  { %v1556_v49 = vpop.f32.mrf.mxu0 }
 0x802   :  { %v890_v50 = vsel %vm889_vm8, %v885_v48, -inf  ;;  %v886_v51 = vadd.f32 %v882_v44, %v858_v47 }
 0x803   :  { %891 = vmax.xlane.f32.xlu0 %v890_v50 }
 0x804   :  { %v893_v52 = vsel %vm889_vm8, %v886_v51, -inf }
 0x805   :  { %894 = vmax.xlane.f32.xlu1 %v893_v52 }
 0x88c   :  { %v892_v55 = vpop.xlane.xlu0 %891 }
 0x88d   :  { %v896_v57 = vmax.f32 %v887_v54, %v892_v55 }
 0x88e   :  { %v895_v58 = vpop.xlane.xlu1 %894 }
 0x88f   :  { %v898_v59 = vsub.f32 %v887_v54, %v896_v57  ;;  %1123 = vst.msk [vmem:[#allocation3] sm:$0x1] %vm601_vm7, %v896_v57  ;;  %v897_v60 = vmax.f32 %v888_v56, %v895_v58  ;;  %906 = vperm.xlu0 %1616, %v896_v57   ;;  %v1154_v57 = vld [vmem:[#allocation15] sm:$0x1] }
 0x891   :  { %v899_v62 = vsub.f32 %v888_v56, %v897_v60  ;;  %1124 = vst.msk [vmem:[#allocation3 + $0x1] sm:$0x1] %vm601_vm7, %v897_v60  ;;  %915 = vperm.xlu1 %1617, %v897_v60   ;;  %v900_v12 = vmul.f32 1.442695, %v898_v59 }
 0x895   :  { %965 = vrot.lane.b32.xlu1 %v2242_v17, %s1986_s11 }
 0x899   :  { %1042 = vrot.lane.b32.xlu1 %v2240_v16, %s1986_s11  ;;  %v902_v16 = vmul.f32 1.442695, %v899_v62 }
 0x90a   :  { %v907_v1 = vpop.permute.xlu0 %906 }
 0x90b   :  { %v912_v2 = vrot.slane %v907_v1, %v2282_v63 }
 0x90c   :  { %v916_v3 = vpop.permute.xlu1 %915 }
 0x90d   :  { %v922_v4 = vsub.f32 %v885_v48, %v912_v2  ;;  %v921_v5 = vrot.slane %v916_v3, %v2282_v63 }
 0x90f   :  { %v924_v6 = vmul.f32 1.442695, %v922_v4  ;;  %v923_v7 = vsub.f32 %v886_v51, %v921_v5 }
 0x910   :  { %v966_v8 = vpop.permute.xlu1 %965 }
 0x911   :  { %1634 = vpow2.f32 %v924_v6  ;;  %v926_v9 = vmul.f32 1.442695, %v923_v7  ;;  %1558 = vmatpush3.msra.mxu1 %v966_v8  ;;  %v1164_v6 = vld [vmem:[%s2371_s16] sm:$0xff] }
 0x912   :  { %1567 = vmatprep.subr.mxu1 %v1979_v0  ;;  %v1430_v7 = vld [vmem:[%s2370_s15] ss:$0 sm:$0xff] }
 0x913   :  { %1636 = vpow2.f32 %v926_v9 }
 0x914   :  { %v1043_v10 = vpop.permute.xlu1 %1042  ;;  %1638 = vpow2.f32 %v900_v12 }
 0x915   :  { %1563 = vmatpush3.msra.mxu0 %v1043_v10  ;;  %1640 = vpow2.f32 %v902_v16 }
 0x916   :  { %1578 = vmatprep.subr.mxu0 %v1979_v0 }
 0x91e   :  { %v1635_v11 = vpop.eup %1634 }
 0x91f   :  { %1560 = vmatmul.mubr.msk.f32.vlgmr.msra.gmra.mxu1 %vm968_vm9, %v1635_v11  ;;  %v932_v13 = vsel %vm889_vm8, %v1635_v11, 0.0 }
 0x920   :  { %v1637_v14 = vpop.eup %1636  ;;  %933 = vadd.xlane.f32.xlu1 %v932_v13  ;;  %1575 = vmatprep.mubr.msk.f32.mxu1 %vm1980_vm0, %v1979_v0 }
 0x921   :  { %1565 = vmatmul.mubr.msk.f32.vlgmr.msra.gmra.mxu0 %vm968_vm9, %v1637_v14  ;;  %v935_v15 = vsel %vm889_vm8, %v1637_v14, 0.0  ;;  %v1639_v17 = vpop.eup %1638  ;;  %1568 = vmatpush3.msra.mxu1 %v1162_v33 }
 0x922   :  { %936 = vadd.xlane.f32.xlu0 %v935_v15  ;;  %1586 = vmatprep.mubr.msk.f32.mxu0 %vm1980_vm0, %v1979_v0  ;;  %v1641_v18 = vpop.eup %1640  ;;  %v930_v21 = vmul.f32 %v1639_v17, %v928_v19 }
 0x923   :  { %v931_v25 = vmul.f32 %v1641_v18, %v929_v20  ;;  %1569 = vmatprep.subr.mxu1 %v1979_v0  ;;  %1579 = vmatpush3.msra.mxu0 %v1167_v37 }
 0x924   :  { %1570 = vmatpush3.msra.mxu1 %v1161_v34  ;;  %1580 = vmatprep.subr.mxu0 %v1979_v0 }
 0x925   :  { %1571 = vmatprep.subr.mxu1 %v1979_v0  ;;  %1581 = vmatpush3.msra.mxu0 %v1166_v38 }
 0x926   :  { %1572 = vmatpush3.msra.mxu1 %v1160_v35  ;;  %1582 = vmatprep.subr.mxu0 %v1979_v0 }
 0x927   :  { %1573 = vmatprep.subr.mxu1 %v1979_v0 }
 0x928   :  { %1574 = vmatpush3.msra.mxu1 %v1159_v36 }
 0x931   :  { %947 = vperm.xlu1 %1617, %v1639_v17  }
 0x938   :  { %956 = vperm.xlu0 %1616, %v1641_v18  }
 0x9a9   :  { %v934_v22 = vpop.xlane.xlu1 %933 }
 0x9aa   :  { %v938_v23 = vadd.f32 %v934_v22, %v930_v21 }
 0x9ab   :  { %v937_v26 = vpop.xlane.xlu0 %936 }
 0x9ac   :  { %941 = vst.msk [vmem:[#allocation4] sm:$0x1] %vm601_vm7, %v938_v23  ;;  %v939_v27 = vadd.f32 %v937_v26, %v931_v25 }
 0x9ae   :  { %942 = vst.msk [vmem:[#allocation4 + $0x1] sm:$0x1] %vm601_vm7, %v939_v27 }
 0x9b3   :  { %v1128_v28 = vld [vmem:[#allocation4] sm:$0x1]  ;;  %v957_v39 = vpop.permute.xlu0 %956 }
 0x9b4   :  { %1642 = vrcp.f32 %v1128_v28 }
 0x9b5   :  { %v1129_v29 = vld [vmem:[#allocation4 + $0x1] sm:$0x1] }
 0x9b6   :  { %1644 = vrcp.f32 %v1129_v29 }
 0x9c1   :  { %v1643_v31 = vpop.eup %1642 }
 0x9c2   :  { %1136 = vperm.xlu1 %1617, %v1643_v31  }
 0x9c3   :  { %v1645_v32 = vpop.eup %1644 }
 0x9c6   :  { %1145 = vperm.xlu1 %1617, %v1645_v32  }
 0x9ca   :  { %344 = vrot.lane.b32.xlu1 %v2170_v30, %s1986_s11  ;;  %v948_v30 = vpop.permute.xlu1 %947 }
 0x9cb   :  { %v953_v40 = vrot.slane %v948_v30, %v2282_v63 }
 0x9cd   :  { %v963_v43 = vmul.f32 %v953_v40, %v943_v41 }
 0x9ce   :  { %482 = vrot.lane.b32.xlu1 %v2191_v61, %s1986_s11  ;;  %v962_v61 = vrot.slane %v957_v39, %v2282_v63 }
 0x9d0   :  { %v964_v46 = vmul.f32 %v962_v61, %v944_v42 }
 0x9df   :  { %v1038_v44 = vpop.f32.mrf.mxu1 }
 0x9e0   :  { %v1118_v45 = vadd.f32 %v1038_v44, %v963_v43 }
 0x9e1   :  { %v1561_v47 = vpop.f32.mrf.mxu1  ;;  %v1114_v48 = vpop.f32.mrf.mxu0 }
 0x9e2   :  { %1121 = vst.msk [vmem:[#allocation5] sm:$0x1] %vm598_vm6, %v1118_v45  ;;  %v1119_v49 = vadd.f32 %v1114_v48, %v964_v46 }
 0x9e3   :  { %v1566_v50 = vpop.f32.mrf.mxu0 }
 0x9e4   :  { %1122 = vst.msk [vmem:[#allocation5 + $0x1] sm:$0x1] %vm598_vm6, %v1119_v49 }
 0x9e9   :  { %v1132_v53 = vld [vmem:[#allocation5] sm:$0x1] }
 0x9eb   :  { %v1133_v58 = vld [vmem:[#allocation5 + $0x1] sm:$0x1] }
 0xa3d   :  { %v1137_v51 = vpop.permute.xlu1 %1136 }
 0xa3e   :  { %v1142_v52 = vrot.slane %v1137_v51, %v2282_v63 }
 0xa40   :  { %v1152_v55 = vmul.f32 %v1142_v52, %v1132_v53 }
 0xa41   :  { %v1146_v54 = vpop.permute.xlu1 %1145 }
 0xa42   :  { %v1151_v56 = vrot.slane %v1146_v54, %v2282_v63  ;;  %v1155_v62 = vmul.f32 %v1154_v57, %v1152_v55  ;;  %v1165_v63 = vld [vmem:[%s2371_s16 + $0x8] sm:$0xff] }
 0xa43   :  { %1583 = vmatpush3.msra.mxu0 %v1165_v63 }
 0xa44   :  { %v1153_v59 = vmul.f32 %v1151_v56, %v1133_v58  ;;  %1584 = vmatprep.subr.mxu0 %v1979_v0 }
 0xa45   :  { %v345_v60 = vpop.permute.xlu1 %344  ;;  %1585 = vmatpush3.msra.mxu0 %v1164_v6 }
 0xa46   :  { %v1156_v1 = vmul.f32 %v1154_v57, %v1153_v59  ;;  %347 = vst.msk [vmem:[#allocation28] sm:$0x3] %vm341_vm3, %v345_v60 }
 0xa48   :  { %v1177_v2 = vcombine.low %v1155_v62, %v1156_v1 }
 0xa49   :  { %v483_v3 = vpop.permute.xlu1 %482 }
 0xa4a   :  { %v1184_v4 = vrot.slane %v1177_v2, %v2253_v24  ;;  %486 = vst.msk [vmem:[#allocation28 + $0x2] sm:$0x3] %vm341_vm3, %v483_v3 }
 0xa4c   :  { %v1191_v5 = vrot.slane %v1184_v4, %v2253_v24 }
 0xa4e   :  { %1576 = vmatmul.mubr.msk.f32.vlgmr.msra.gmra.mxu1 %vm365_vm4, %v1191_v5 }
 0xb0e   :  { %v1260_v8 = vpop.f32.mrf.mxu1 }
 0xb0f   :  { %v1261_v24 = vadd.f32 %v1430_v7, %v1260_v8 }
 0xb10   :  { %v1577_v9 = vpop.f32.mrf.mxu1 }
 0xb11   :  { %1344 = vst.msk [vmem:[#allocation25] sm:$0x3] %vm341_vm3, %v1261_v24  ;;  %1587 = vmatmul.mubr.msk.f32.vlgmr.msra.gmra.mxu0 %vm365_vm4, %v1261_v24 }
 0xb12   :  { %1877 = shalt.err (!%p1874_p3)
}
 0xb13   :  { %1366 = dma.vmem_to_hbm [thread:$0]  %s1364_s22, 32, %s2374_s19, [#allocation26]  }
 0xb14   :  { %s1988_s15 = smov [#allocation27]   ;;  %s1989_s10 = smov [#allocation28]  }
 0xb15   :  { %s1372_s23 = sshll.u32 %s1988_s15, 4  ;;  %s1384_s6 = sshll.u32 %s1989_s10, 4  ;;  %s1373_s23 = int_to_ptr.vmem [resolvable:$true] %s1372_s23  ;;  %s1385_s6 = int_to_ptr.vmem [resolvable:$true] %s1384_s6 }
 0xb16   :  { %s1886_s12 = scalar_lea.vmem %s1373_s23, 64  ;;  %p1891_p5 = scmp.lt.s32.totalorder %s1373_s23, %s1373_s23 }
 0xb17   :  { %p1887_p4 = scmp.ne.s32.totalorder %s1373_s23, %s1886_s12  ;;  %p1892_p6 = scmp.lt.s32.totalorder %s1886_s12, %s1886_s12 }
 0xb19   :  { %p1893_p7 = por %p1892_p6, %p1891_p5 }
 0xb1b   :  { %p1894_p8 = pnand %p1893_p7, %p1887_p4 }
 0xb1d   :  { %1897 = shalt.err (!%p1894_p8)
}
 0xb1e   :  { %1378 = dma.vmem_to_hbm [thread:$0]  %s1373_s23, 64, %s2375_s20, [#allocation26], %s1966_s30, %s1966_s30, %s1967_s5  }
 0xb1f   :  { %s1906_s19 = scalar_lea.vmem %s1385_s6, 64  ;;  %p1911_p10 = scmp.lt.s32.totalorder %s1385_s6, %s1385_s6 }
 0xb20   :  { %p1907_p9 = scmp.ne.s32.totalorder %s1385_s6, %s1906_s19  ;;  %p1912_p11 = scmp.lt.s32.totalorder %s1906_s19, %s1906_s19 }
 0xb22   :  { %p1913_p12 = por %p1912_p11, %p1911_p10 }
 0xb24   :  { %p1914_p13 = pnand %p1913_p12, %p1907_p9 }
 0xb26   :  { %1917 = shalt.err (!%p1914_p13)
}
 0xb27   :  { %1390 = dma.vmem_to_hbm [thread:$0]  %s1385_s6, 64, %s2376_s21, [#allocation29], %s1966_s30, %s1966_s30, %s1967_s5   ;;  %vm1345_vm10 = vcmask 123904  }
 0xb28   :  { %v1432_v0 = vld [vmem:[%s2372_s17] ss:$0 sm:$0xff]  ;;  %s1990_s20 = smov [#allocation24]  }
 0xb29   :  { %s1353_s25 = sshll.u32 %s1990_s20, 4  ;;  %s1354_s25 = int_to_ptr.vmem [resolvable:$true] %s1353_s25 }
 0xb2a   :  { %s1926_s24 = scalar_lea.vmem %s1354_s25, 32  ;;  %p1931_p1 = scmp.lt.s32.totalorder %s1354_s25, %s1354_s25 }
 0xb2b   :  { %p1927_p0 = scmp.ne.s32.totalorder %s1354_s25, %s1926_s24  ;;  %p1932_p2 = scmp.lt.s32.totalorder %s1926_s24, %s1926_s24 }
 0xb2d   :  { %p1933_p3 = por %p1932_p2, %p1931_p1 }
 0xb2f   :  { %p1934_p4 = pnand %p1933_p3, %p1927_p0 }
 0xbd1   :  { %v1339_v10 = vpop.f32.mrf.mxu0 }
 0xbd2   :  { %v1340_v11 = vadd.f32 %v1432_v0, %v1339_v10 }
 0xbd3   :  { %v1588_v12 = vpop.f32.mrf.mxu0 }
 0xbd4   :  { %1346 = vst.msk [vmem:[#allocation24] sm:$0x3] %vm1345_vm10, %v1340_v11 }
 0xbd5   :  { %1937 = shalt.err (!%p1934_p4)
}
 0xbd6   :  { %1356 = dma.vmem_to_hbm [thread:$0]  %s1354_s25, 32, %s2373_s18, [#allocation8]  }
 0xbd7   :  { %1958 = dma.done.wait [#allocation8], 32  }
 0xbd8   :  { %1959 = vsyncadd [#allocation8], 4294967264 }
 0xbd9   :  { %1960 = dma.done.wait [#allocation26], 96  }
 0xbda   :  { %1961 = vsyncadd [#allocation26], 4294967200 }
 0xbdb   :  { %1962 = dma.done.wait [#allocation29], 64  }
 0xbdc   :  { %1963 = vsyncadd [#allocation29], 4294967232 }
 0xbdd   :  { %1403 = vsyncpa [#allocation7], 1 }
 0xbde   :  { %1404 = vsyncpa [#allocation10], 1 }
 0xbdf   :  { %1405 = vsyncpa [#allocation13], 1 }
 0xbe0   :  { %1406 = vsyncpa [#allocation16], 1 }
 0xbe1   :  { %1407 = vsyncpa [#allocation19], 1 }
 0xbe2   :  { %1408 = vsyncpa [#allocation22], 1 }
 0xbe3   :  { %1409 = vsyncpa [#allocation8], 1 }
 0xbe4   :  { %1410 = vsyncpa [#allocation26], 1 }
 0xbe5   :  { %1411 = vsyncpa [#allocation29], 1 }

</bundles_post_ra>
